<compile_context>
chip_gen: v6e
topology: v6e:2x2x1
jax: 0.10.0
libtpu: 0.0.40
codegen_flags: <defaults>
</compile_context>

<pallas_src>
import jax
import jax.numpy as jnp
import numpy as np
from jax.experimental import pallas as pl
from jax.experimental.pallas import tpu as pltpu


def _make_lstm_kernel(num_layers, S, F, H, O_pad):
    """Pallas kernel: multi-layer unidirectional LSTM over a length-S sequence,
    followed by ReLU + Linear, all inside one kernel.  Gate order in the packed
    weights/bias is (i, f, o, g)."""

    def kernel(*refs):
        xs_ref = refs[0]                                   # (S, F)
        layer_refs = refs[1:1 + 3 * num_layers]            # per layer: wih_t, whh_t, bias
        wout_ref = refs[1 + 3 * num_layers]                # (H, O_pad)
        bout_ref = refs[2 + 3 * num_layers]                # (1, O_pad)
        out_ref = refs[3 + 3 * num_layers]                 # (S, O_pad)
        seq_ref = refs[4 + 3 * num_layers]                 # VMEM scratch (S, H)
        xproj_ref = refs[5 + 3 * num_layers]               # VMEM scratch (S, 4H)

        for l in range(num_layers):
            wih = layer_refs[3 * l][...]                   # (in_l, 4H), cols i,f,o,g
            whh = layer_refs[3 * l + 1][...]               # (H, 4H),   cols i,f,o,g
            b = layer_refs[3 * l + 2][...]                 # (1, 4H) = b_ih + b_hh
            in_ref = xs_ref if l == 0 else seq_ref

            # Hoisted input projection: one well-shaped MXU matmul per layer,
            # bias folded in so it is off the per-step serial chain.
            xproj_ref[...] = (jnp.dot(in_ref[...], wih,
                                      preferred_element_type=jnp.float32) + b)

            h = jnp.zeros((1, H), jnp.float32)
            c = jnp.zeros((1, H), jnp.float32)
            # S is static and small: fully unroll with static indices so the
            # per-step slices/stores are free and independent per-step work
            # overlaps with the serial h/c dependency chain.
            for t in range(S):
                gates = (xproj_ref[pl.ds(t, 1), :]
                         + jnp.dot(h, whh, preferred_element_type=jnp.float32))
                # gate order (i, f, o, g): one sigmoid over 3H lanes, one tanh over H.
                sig = jax.nn.sigmoid(gates[:, 0:3 * H])
                g_g = jnp.tanh(gates[:, 3 * H:4 * H])
                i_g = sig[:, 0:H]
                f_g = sig[:, H:2 * H]
                o_g = sig[:, 2 * H:3 * H]
                c = f_g * c + i_g * g_g
                h = o_g * jnp.tanh(c)
                seq_ref[pl.ds(t, 1), :] = h                # layer output at step t

        # Dropout(p=0.0) is the identity; then ReLU + lane-dense Linear.
        hid = jnp.maximum(seq_ref[...], 0.0)               # (S, H)
        out_ref[...] = (jnp.dot(hid, wout_ref[...],
                                preferred_element_type=jnp.float32) + bout_ref[...])

    return kernel


def _reorder_gates(w):
    """Permute the last axis (4H wide) from PyTorch gate order (i,f,g,o) to (i,f,o,g)."""
    H = w.shape[-1] // 4
    return jnp.concatenate(
        [w[..., 0:2 * H], w[..., 3 * H:4 * H], w[..., 2 * H:3 * H]], axis=-1)


def pack_params(params):
    """One-time parameter packing (kept OUT of the hot path): transpose, sum biases,
    reorder gates to (i,f,o,g), and pad the output projection to a lane-dense width."""
    layers_packed = []
    for (wih, whh, bih, bhh) in params["layers"]:
        layers_packed.append((
            _reorder_gates(jnp.transpose(wih).astype(jnp.float32)),    # (in_l, 4H)
            _reorder_gates(jnp.transpose(whh).astype(jnp.float32)),    # (H, 4H)
            _reorder_gates((bih + bhh).astype(jnp.float32))[None, :],  # (1, 4H)
        ))
    wout_t = jnp.transpose(params["wout"]).astype(jnp.float32)         # (H, O)
    bout = params["bout"].astype(jnp.float32)[None, :]                 # (1, O)
    H, O = int(wout_t.shape[0]), int(wout_t.shape[1])
    O_pad = ((O + 127) // 128) * 128
    if O_pad != O:
        wout_t = jnp.pad(wout_t, ((0, 0), (0, O_pad - O)))
        bout = jnp.pad(bout, ((0, 0), (0, O_pad - O)))
    return {
        "layers": layers_packed,
        "wout_t": wout_t,           # (H, O_pad)
        "bout": bout,               # (1, O_pad)
        "H": H, "O": O, "O_pad": O_pad,
        "num_layers": len(layers_packed),
    }


def lstm_model_forward(x, packed):
    """x: (B, T, F) float32.  Returns (B, O) float32, matching LSTMModel.forward."""
    xs = x[:, -1, :].astype(jnp.float32)                   # (S=B, F)
    S, F = int(xs.shape[0]), int(xs.shape[1])
    H = packed["H"]
    O = packed["O"]
    O_pad = packed["O_pad"]
    num_layers = packed["num_layers"]

    inputs = [xs]
    for (wih_t, whh_t, b) in packed["layers"]:
        inputs += [wih_t, whh_t, b]
    inputs += [packed["wout_t"], packed["bout"]]

    kernel = _make_lstm_kernel(num_layers, S, F, H, O_pad)
    out_padded = pl.pallas_call(
        kernel,
        out_shape=jax.ShapeDtypeStruct((S, O_pad), jnp.float32),
        in_specs=[pl.BlockSpec(memory_space=pltpu.MemorySpace.VMEM)] * len(inputs),
        out_specs=pl.BlockSpec(memory_space=pltpu.MemorySpace.VMEM),
        scratch_shapes=[pltpu.VMEM((S, H), jnp.float32),        # layer output sequence
                        pltpu.VMEM((S, 4 * H), jnp.float32)],   # hoisted input projection
    )(*inputs)
    return out_padded[:, :O]

# TODO(synk): for scaled-up H/L (weights >> VMEM, esp. v7x 64 MiB) switch wih/whh to
# memory_space=pl.ANY with per-layer double-buffered DMA instead of full VMEM residency.


def ref_forward(x, params):
    """Pure NumPy reference mirroring PyTorch LSTM semantics (gate order i,f,g,o)."""
    xs = np.asarray(x)[:, -1, :].astype(np.float32)

    def sigmoid(z):
        return 1.0 / (1.0 + np.exp(-z))

    h_seq = xs
    for (wih, whh, bih, bhh) in params["layers"]:
        wih, whh = np.asarray(wih), np.asarray(whh)
        bih, bhh = np.asarray(bih), np.asarray(bhh)
        H = whh.shape[1]
        h = np.zeros(H, np.float32)
        c = np.zeros(H, np.float32)
        outs = []
        for t in range(h_seq.shape[0]):
            g = wih @ h_seq[t] + bih + whh @ h + bhh
            i = sigmoid(g[0:H])
            f = sigmoid(g[H:2 * H])
            gg = np.tanh(g[2 * H:3 * H])
            o = sigmoid(g[3 * H:4 * H])
            c = f * c + i * gg
            h = o * np.tanh(c)
            outs.append(h)
        h_seq = np.stack(outs).astype(np.float32)
    h_seq = np.maximum(h_seq, 0.0)
    return h_seq @ np.asarray(params["wout"]).T + np.asarray(params["bout"])


if __name__ == "__main__":
    # Small shapes consistent with the module:
    B, T, F, H, L, O = 8, 4, 16, 32, 2, 8   # batch, time, inputFeatures, hiddenFeatures, layers, outputDim
    key = jax.random.PRNGKey(0)
    bound = 1.0 / np.sqrt(H)

    layers = []
    for l in range(L):
        in_dim = F if l == 0 else H
        key, k1, k2, k3, k4 = jax.random.split(key, 5)
        layers.append((
            jax.random.uniform(k1, (4 * H, in_dim), jnp.float32, -bound, bound),  # weight_ih_l{l}
            jax.random.uniform(k2, (4 * H, H), jnp.float32, -bound, bound),       # weight_hh_l{l}
            jax.random.uniform(k3, (4 * H,), jnp.float32, -bound, bound),         # bias_ih_l{l}
            jax.random.uniform(k4, (4 * H,), jnp.float32, -bound, bound),         # bias_hh_l{l}
        ))
    key, k5, k6, kx = jax.random.split(key, 4)
    params = {
        "layers": layers,
        "wout": jax.random.uniform(k5, (O, H), jnp.float32, -bound, bound),       # Linear.weight
        "bout": jax.random.uniform(k6, (O,), jnp.float32, -bound, bound),         # Linear.bias
    }

    x = jax.random.normal(kx, (B, T, F), jnp.float32)

    # Pack parameters once, outside the hot path.
    packed = pack_params(params)

    out = lstm_model_forward(x, packed)
    out = jax.block_until_ready(out)

    ref = ref_forward(x, params)
    assert out.shape == (B, O)
    np.testing.assert_allclose(np.asarray(out), ref, rtol=2e-4, atol=2e-4)
    print("KERNEL_OK")
</pallas_src>

<mosaic_0001>
module attributes {stable_mosaic.version = 11 : i64} {
  func.func @kernel(%arg0: memref<8x16xf32, #tpu.memory_space<vmem>>, %arg1: memref<16x128xf32, #tpu.memory_space<vmem>>, %arg2: memref<32x128xf32, #tpu.memory_space<vmem>>, %arg3: memref<1x128xf32, #tpu.memory_space<vmem>>, %arg4: memref<32x128xf32, #tpu.memory_space<vmem>>, %arg5: memref<32x128xf32, #tpu.memory_space<vmem>>, %arg6: memref<1x128xf32, #tpu.memory_space<vmem>>, %arg7: memref<32x128xf32, #tpu.memory_space<vmem>>, %arg8: memref<1x128xf32, #tpu.memory_space<vmem>>, %arg9: memref<8x128xf32, #tpu.memory_space<vmem>>, %arg10: memref<8x32xf32, #tpu.memory_space<vmem>>, %arg11: memref<8x128xf32, #tpu.memory_space<vmem>>) attributes {dimension_semantics = [], scalar_prefetch = 0 : i64, scratch_operands = 2 : i64, tpu.core_type = #tpu.core_type<tc>} {
    %c0 = arith.constant 0 : index
    %c0_0 = arith.constant 0 : index
    %0 = vector.load %arg1[%c0, %c0_0] : memref<16x128xf32, #tpu.memory_space<vmem>>, vector<16x128xf32>
    %c0_1 = arith.constant 0 : index
    %c0_2 = arith.constant 0 : index
    %1 = vector.load %arg2[%c0_1, %c0_2] : memref<32x128xf32, #tpu.memory_space<vmem>>, vector<32x128xf32>
    %c0_3 = arith.constant 0 : index
    %c0_4 = arith.constant 0 : index
    %2 = vector.load %arg3[%c0_3, %c0_4] : memref<1x128xf32, #tpu.memory_space<vmem>>, vector<1x128xf32>
    %c0_5 = arith.constant 0 : index
    %c0_6 = arith.constant 0 : index
    %3 = vector.load %arg0[%c0_5, %c0_6] : memref<8x16xf32, #tpu.memory_space<vmem>>, vector<8x16xf32>
    %cst = arith.constant dense<0.000000e+00> : vector<8x128xf32>
    %4 = tpu.matmul %3, %0, %cst {dimension_numbers = #tpu.dot_dimension_numbers<[1], [0], [0], [1], [0, 0, 1, 1], [], []>} : vector<8x16xf32>, vector<16x128xf32>, vector<8x128xf32> -> vector<8x128xf32>
    %5 = vector.broadcast %2 : vector<1x128xf32> to vector<8x128xf32>
    %6 = arith.addf %4, %5 : vector<8x128xf32>
    %c0_7 = arith.constant 0 : index
    %c0_8 = arith.constant 0 : index
    %7 = vector.load %arg11[%c0_7, %c0_8] : memref<8x128xf32, #tpu.memory_space<vmem>>, vector<8x128xf32>
    tpu.vector_store %arg11[%c0_7, %c0_8], %6 {strides = array<i32>} : memref<8x128xf32, #tpu.memory_space<vmem>>, vector<8x128xf32>,
    %cst_9 = arith.constant 0.000000e+00 : f32
    %8 = vector.broadcast %cst_9 : f32 to vector<1x32xf32>
    %cst_10 = arith.constant 0.000000e+00 : f32
    %9 = vector.broadcast %cst_10 : f32 to vector<1x32xf32>
    %c0_11 = arith.constant 0 : index
    %c0_12 = arith.constant 0 : index
    %10 = vector.load %arg11[%c0_11, %c0_12] : memref<8x128xf32, #tpu.memory_space<vmem>>, vector<1x128xf32>
    %cst_13 = arith.constant dense<0.000000e+00> : vector<1x128xf32>
    %11 = tpu.matmul %8, %1, %cst_13 {dimension_numbers = #tpu.dot_dimension_numbers<[1], [0], [0], [1], [0, 0, 1, 1], [], []>} : vector<1x32xf32>, vector<32x128xf32>, vector<1x128xf32> -> vector<1x128xf32>
    %12 = arith.addf %10, %11 : vector<1x128xf32>
    %13 = vector.extract_strided_slice %12 {offsets = [0, 0], sizes = [1, 96], strides = [1, 1]} : vector<1x128xf32> to vector<1x96xf32>
    %14 = arith.negf %13 : vector<1x96xf32>
    %15 = math.exp %14 : vector<1x96xf32>
    %cst_14 = arith.constant 1.000000e+00 : f32
    %16 = vector.broadcast %cst_14 : f32 to vector<1x96xf32>
    %17 = arith.addf %16, %15 : vector<1x96xf32>
    %18 = arith.divf %16, %17 : vector<1x96xf32>
    %19 = vector.extract_strided_slice %12 {offsets = [0, 96], sizes = [1, 32], strides = [1, 1]} : vector<1x128xf32> to vector<1x32xf32>
    %20 = math.tanh %19 : vector<1x32xf32>
    %21 = vector.extract_strided_slice %18 {offsets = [0, 0], sizes = [1, 32], strides = [1, 1]} : vector<1x96xf32> to vector<1x32xf32>
    %22 = vector.extract_strided_slice %18 {offsets = [0, 32], sizes = [1, 32], strides = [1, 1]} : vector<1x96xf32> to vector<1x32xf32>
    %23 = vector.extract_strided_slice %18 {offsets = [0, 64], sizes = [1, 32], strides = [1, 1]} : vector<1x96xf32> to vector<1x32xf32>
    %24 = arith.mulf %22, %9 : vector<1x32xf32>
    %25 = arith.mulf %21, %20 : vector<1x32xf32>
    %26 = arith.addf %24, %25 : vector<1x32xf32>
    %27 = math.tanh %26 : vector<1x32xf32>
    %28 = arith.mulf %23, %27 : vector<1x32xf32>
    %c0_15 = arith.constant 0 : index
    %c0_16 = arith.constant 0 : index
    %29 = vector.load %arg10[%c0_15, %c0_16] : memref<8x32xf32, #tpu.memory_space<vmem>>, vector<1x32xf32>
    tpu.vector_store %arg10[%c0_15, %c0_16], %28 {strides = array<i32>} : memref<8x32xf32, #tpu.memory_space<vmem>>, vector<1x32xf32>,
    %c1 = arith.constant 1 : index
    %c0_17 = arith.constant 0 : index
    %30 = vector.load %arg11[%c1, %c0_17] : memref<8x128xf32, #tpu.memory_space<vmem>>, vector<1x128xf32>
    %cst_18 = arith.constant dense<0.000000e+00> : vector<1x128xf32>
    %31 = tpu.matmul %28, %1, %cst_18 {dimension_numbers = #tpu.dot_dimension_numbers<[1], [0], [0], [1], [0, 0, 1, 1], [], []>} : vector<1x32xf32>, vector<32x128xf32>, vector<1x128xf32> -> vector<1x128xf32>
    %32 = arith.addf %30, %31 : vector<1x128xf32>
    %33 = vector.extract_strided_slice %32 {offsets = [0, 0], sizes = [1, 96], strides = [1, 1]} : vector<1x128xf32> to vector<1x96xf32>
    %34 = arith.negf %33 : vector<1x96xf32>
    %35 = math.exp %34 : vector<1x96xf32>
    %cst_19 = arith.constant 1.000000e+00 : f32
    %36 = vector.broadcast %cst_19 : f32 to vector<1x96xf32>
    %37 = arith.addf %36, %35 : vector<1x96xf32>
    %38 = arith.divf %36, %37 : vector<1x96xf32>
    %39 = vector.extract_strided_slice %32 {offsets = [0, 96], sizes = [1, 32], strides = [1, 1]} : vector<1x128xf32> to vector<1x32xf32>
    %40 = math.tanh %39 : vector<1x32xf32>
    %41 = vector.extract_strided_slice %38 {offsets = [0, 0], sizes = [1, 32], strides = [1, 1]} : vector<1x96xf32> to vector<1x32xf32>
    %42 = vector.extract_strided_slice %38 {offsets = [0, 32], sizes = [1, 32], strides = [1, 1]} : vector<1x96xf32> to vector<1x32xf32>
    %43 = vector.extract_strided_slice %38 {offsets = [0, 64], sizes = [1, 32], strides = [1, 1]} : vector<1x96xf32> to vector<1x32xf32>
    %44 = arith.mulf %42, %26 : vector<1x32xf32>
    %45 = arith.mulf %41, %40 : vector<1x32xf32>
    %46 = arith.addf %44, %45 : vector<1x32xf32>
    %47 = math.tanh %46 : vector<1x32xf32>
    %48 = arith.mulf %43, %47 : vector<1x32xf32>
    %c1_20 = arith.constant 1 : index
    %c0_21 = arith.constant 0 : index
    %49 = vector.load %arg10[%c1_20, %c0_21] : memref<8x32xf32, #tpu.memory_space<vmem>>, vector<1x32xf32>
    tpu.vector_store %arg10[%c1_20, %c0_21], %48 {strides = array<i32>} : memref<8x32xf32, #tpu.memory_space<vmem>>, vector<1x32xf32>,
    %c2 = arith.constant 2 : index
    %c0_22 = arith.constant 0 : index
    %50 = vector.load %arg11[%c2, %c0_22] : memref<8x128xf32, #tpu.memory_space<vmem>>, vector<1x128xf32>
    %cst_23 = arith.constant dense<0.000000e+00> : vector<1x128xf32>
    %51 = tpu.matmul %48, %1, %cst_23 {dimension_numbers = #tpu.dot_dimension_numbers<[1], [0], [0], [1], [0, 0, 1, 1], [], []>} : vector<1x32xf32>, vector<32x128xf32>, vector<1x128xf32> -> vector<1x128xf32>
    %52 = arith.addf %50, %51 : vector<1x128xf32>
    %53 = vector.extract_strided_slice %52 {offsets = [0, 0], sizes = [1, 96], strides = [1, 1]} : vector<1x128xf32> to vector<1x96xf32>
    %54 = arith.negf %53 : vector<1x96xf32>
    %55 = math.exp %54 : vector<1x96xf32>
    %cst_24 = arith.constant 1.000000e+00 : f32
    %56 = vector.broadcast %cst_24 : f32 to vector<1x96xf32>
    %57 = arith.addf %56, %55 : vector<1x96xf32>
    %58 = arith.divf %56, %57 : vector<1x96xf32>
    %59 = vector.extract_strided_slice %52 {offsets = [0, 96], sizes = [1, 32], strides = [1, 1]} : vector<1x128xf32> to vector<1x32xf32>
    %60 = math.tanh %59 : vector<1x32xf32>
    %61 = vector.extract_strided_slice %58 {offsets = [0, 0], sizes = [1, 32], strides = [1, 1]} : vector<1x96xf32> to vector<1x32xf32>
    %62 = vector.extract_strided_slice %58 {offsets = [0, 32], sizes = [1, 32], strides = [1, 1]} : vector<1x96xf32> to vector<1x32xf32>
    %63 = vector.extract_strided_slice %58 {offsets = [0, 64], sizes = [1, 32], strides = [1, 1]} : vector<1x96xf32> to vector<1x32xf32>
    %64 = arith.mulf %62, %46 : vector<1x32xf32>
    %65 = arith.mulf %61, %60 : vector<1x32xf32>
    %66 = arith.addf %64, %65 : vector<1x32xf32>
    %67 = math.tanh %66 : vector<1x32xf32>
    %68 = arith.mulf %63, %67 : vector<1x32xf32>
    %c2_25 = arith.constant 2 : index
    %c0_26 = arith.constant 0 : index
    %69 = vector.load %arg10[%c2_25, %c0_26] : memref<8x32xf32, #tpu.memory_space<vmem>>, vector<1x32xf32>
    tpu.vector_store %arg10[%c2_25, %c0_26], %68 {strides = array<i32>} : memref<8x32xf32, #tpu.memory_space<vmem>>, vector<1x32xf32>,
    %c3 = arith.constant 3 : index
    %c0_27 = arith.constant 0 : index
    %70 = vector.load %arg11[%c3, %c0_27] : memref<8x128xf32, #tpu.memory_space<vmem>>, vector<1x128xf32>
    %cst_28 = arith.constant dense<0.000000e+00> : vector<1x128xf32>
    %71 = tpu.matmul %68, %1, %cst_28 {dimension_numbers = #tpu.dot_dimension_numbers<[1], [0], [0], [1], [0, 0, 1, 1], [], []>} : vector<1x32xf32>, vector<32x128xf32>, vector<1x128xf32> -> vector<1x128xf32>
    %72 = arith.addf %70, %71 : vector<1x128xf32>
    %73 = vector.extract_strided_slice %72 {offsets = [0, 0], sizes = [1, 96], strides = [1, 1]} : vector<1x128xf32> to vector<1x96xf32>
    %74 = arith.negf %73 : vector<1x96xf32>
    %75 = math.exp %74 : vector<1x96xf32>
    %cst_29 = arith.constant 1.000000e+00 : f32
    %76 = vector.broadcast %cst_29 : f32 to vector<1x96xf32>
    %77 = arith.addf %76, %75 : vector<1x96xf32>
    %78 = arith.divf %76, %77 : vector<1x96xf32>
    %79 = vector.extract_strided_slice %72 {offsets = [0, 96], sizes = [1, 32], strides = [1, 1]} : vector<1x128xf32> to vector<1x32xf32>
    %80 = math.tanh %79 : vector<1x32xf32>
    %81 = vector.extract_strided_slice %78 {offsets = [0, 0], sizes = [1, 32], strides = [1, 1]} : vector<1x96xf32> to vector<1x32xf32>
    %82 = vector.extract_strided_slice %78 {offsets = [0, 32], sizes = [1, 32], strides = [1, 1]} : vector<1x96xf32> to vector<1x32xf32>
    %83 = vector.extract_strided_slice %78 {offsets = [0, 64], sizes = [1, 32], strides = [1, 1]} : vector<1x96xf32> to vector<1x32xf32>
    %84 = arith.mulf %82, %66 : vector<1x32xf32>
    %85 = arith.mulf %81, %80 : vector<1x32xf32>
    %86 = arith.addf %84, %85 : vector<1x32xf32>
    %87 = math.tanh %86 : vector<1x32xf32>
    %88 = arith.mulf %83, %87 : vector<1x32xf32>
    %c3_30 = arith.constant 3 : index
    %c0_31 = arith.constant 0 : index
    %89 = vector.load %arg10[%c3_30, %c0_31] : memref<8x32xf32, #tpu.memory_space<vmem>>, vector<1x32xf32>
    tpu.vector_store %arg10[%c3_30, %c0_31], %88 {strides = array<i32>} : memref<8x32xf32, #tpu.memory_space<vmem>>, vector<1x32xf32>,
    %c4 = arith.constant 4 : index
    %c0_32 = arith.constant 0 : index
    %90 = vector.load %arg11[%c4, %c0_32] : memref<8x128xf32, #tpu.memory_space<vmem>>, vector<1x128xf32>
    %cst_33 = arith.constant dense<0.000000e+00> : vector<1x128xf32>
    %91 = tpu.matmul %88, %1, %cst_33 {dimension_numbers = #tpu.dot_dimension_numbers<[1], [0], [0], [1], [0, 0, 1, 1], [], []>} : vector<1x32xf32>, vector<32x128xf32>, vector<1x128xf32> -> vector<1x128xf32>
    %92 = arith.addf %90, %91 : vector<1x128xf32>
    %93 = vector.extract_strided_slice %92 {offsets = [0, 0], sizes = [1, 96], strides = [1, 1]} : vector<1x128xf32> to vector<1x96xf32>
    %94 = arith.negf %93 : vector<1x96xf32>
    %95 = math.exp %94 : vector<1x96xf32>
    %cst_34 = arith.constant 1.000000e+00 : f32
    %96 = vector.broadcast %cst_34 : f32 to vector<1x96xf32>
    %97 = arith.addf %96, %95 : vector<1x96xf32>
    %98 = arith.divf %96, %97 : vector<1x96xf32>
    %99 = vector.extract_strided_slice %92 {offsets = [0, 96], sizes = [1, 32], strides = [1, 1]} : vector<1x128xf32> to vector<1x32xf32>
    %100 = math.tanh %99 : vector<1x32xf32>
    %101 = vector.extract_strided_slice %98 {offsets = [0, 0], sizes = [1, 32], strides = [1, 1]} : vector<1x96xf32> to vector<1x32xf32>
    %102 = vector.extract_strided_slice %98 {offsets = [0, 32], sizes = [1, 32], strides = [1, 1]} : vector<1x96xf32> to vector<1x32xf32>
    %103 = vector.extract_strided_slice %98 {offsets = [0, 64], sizes = [1, 32], strides = [1, 1]} : vector<1x96xf32> to vector<1x32xf32>
    %104 = arith.mulf %102, %86 : vector<1x32xf32>
    %105 = arith.mulf %101, %100 : vector<1x32xf32>
    %106 = arith.addf %104, %105 : vector<1x32xf32>
    %107 = math.tanh %106 : vector<1x32xf32>
    %108 = arith.mulf %103, %107 : vector<1x32xf32>
    %c4_35 = arith.constant 4 : index
    %c0_36 = arith.constant 0 : index
    %109 = vector.load %arg10[%c4_35, %c0_36] : memref<8x32xf32, #tpu.memory_space<vmem>>, vector<1x32xf32>
    tpu.vector_store %arg10[%c4_35, %c0_36], %108 {strides = array<i32>} : memref<8x32xf32, #tpu.memory_space<vmem>>, vector<1x32xf32>,
    %c5 = arith.constant 5 : index
    %c0_37 = arith.constant 0 : index
    %110 = vector.load %arg11[%c5, %c0_37] : memref<8x128xf32, #tpu.memory_space<vmem>>, vector<1x128xf32>
    %cst_38 = arith.constant dense<0.000000e+00> : vector<1x128xf32>
    %111 = tpu.matmul %108, %1, %cst_38 {dimension_numbers = #tpu.dot_dimension_numbers<[1], [0], [0], [1], [0, 0, 1, 1], [], []>} : vector<1x32xf32>, vector<32x128xf32>, vector<1x128xf32> -> vector<1x128xf32>
    %112 = arith.addf %110, %111 : vector<1x128xf32>
    %113 = vector.extract_strided_slice %112 {offsets = [0, 0], sizes = [1, 96], strides = [1, 1]} : vector<1x128xf32> to vector<1x96xf32>
    %114 = arith.negf %113 : vector<1x96xf32>
    %115 = math.exp %114 : vector<1x96xf32>
    %cst_39 = arith.constant 1.000000e+00 : f32
    %116 = vector.broadcast %cst_39 : f32 to vector<1x96xf32>
    %117 = arith.addf %116, %115 : vector<1x96xf32>
    %118 = arith.divf %116, %117 : vector<1x96xf32>
    %119 = vector.extract_strided_slice %112 {offsets = [0, 96], sizes = [1, 32], strides = [1, 1]} : vector<1x128xf32> to vector<1x32xf32>
    %120 = math.tanh %119 : vector<1x32xf32>
    %121 = vector.extract_strided_slice %118 {offsets = [0, 0], sizes = [1, 32], strides = [1, 1]} : vector<1x96xf32> to vector<1x32xf32>
    %122 = vector.extract_strided_slice %118 {offsets = [0, 32], sizes = [1, 32], strides = [1, 1]} : vector<1x96xf32> to vector<1x32xf32>
    %123 = vector.extract_strided_slice %118 {offsets = [0, 64], sizes = [1, 32], strides = [1, 1]} : vector<1x96xf32> to vector<1x32xf32>
    %124 = arith.mulf %122, %106 : vector<1x32xf32>
    %125 = arith.mulf %121, %120 : vector<1x32xf32>
    %126 = arith.addf %124, %125 : vector<1x32xf32>
    %127 = math.tanh %126 : vector<1x32xf32>
    %128 = arith.mulf %123, %127 : vector<1x32xf32>
    %c5_40 = arith.constant 5 : index
    %c0_41 = arith.constant 0 : index
    %129 = vector.load %arg10[%c5_40, %c0_41] : memref<8x32xf32, #tpu.memory_space<vmem>>, vector<1x32xf32>
    tpu.vector_store %arg10[%c5_40, %c0_41], %128 {strides = array<i32>} : memref<8x32xf32, #tpu.memory_space<vmem>>, vector<1x32xf32>,
    %c6 = arith.constant 6 : index
    %c0_42 = arith.constant 0 : index
    %130 = vector.load %arg11[%c6, %c0_42] : memref<8x128xf32, #tpu.memory_space<vmem>>, vector<1x128xf32>
    %cst_43 = arith.constant dense<0.000000e+00> : vector<1x128xf32>
    %131 = tpu.matmul %128, %1, %cst_43 {dimension_numbers = #tpu.dot_dimension_numbers<[1], [0], [0], [1], [0, 0, 1, 1], [], []>} : vector<1x32xf32>, vector<32x128xf32>, vector<1x128xf32> -> vector<1x128xf32>
    %132 = arith.addf %130, %131 : vector<1x128xf32>
    %133 = vector.extract_strided_slice %132 {offsets = [0, 0], sizes = [1, 96], strides = [1, 1]} : vector<1x128xf32> to vector<1x96xf32>
    %134 = arith.negf %133 : vector<1x96xf32>
    %135 = math.exp %134 : vector<1x96xf32>
    %cst_44 = arith.constant 1.000000e+00 : f32
    %136 = vector.broadcast %cst_44 : f32 to vector<1x96xf32>
    %137 = arith.addf %136, %135 : vector<1x96xf32>
    %138 = arith.divf %136, %137 : vector<1x96xf32>
    %139 = vector.extract_strided_slice %132 {offsets = [0, 96], sizes = [1, 32], strides = [1, 1]} : vector<1x128xf32> to vector<1x32xf32>
    %140 = math.tanh %139 : vector<1x32xf32>
    %141 = vector.extract_strided_slice %138 {offsets = [0, 0], sizes = [1, 32], strides = [1, 1]} : vector<1x96xf32> to vector<1x32xf32>
    %142 = vector.extract_strided_slice %138 {offsets = [0, 32], sizes = [1, 32], strides = [1, 1]} : vector<1x96xf32> to vector<1x32xf32>
    %143 = vector.extract_strided_slice %138 {offsets = [0, 64], sizes = [1, 32], strides = [1, 1]} : vector<1x96xf32> to vector<1x32xf32>
    %144 = arith.mulf %142, %126 : vector<1x32xf32>
    %145 = arith.mulf %141, %140 : vector<1x32xf32>
    %146 = arith.addf %144, %145 : vector<1x32xf32>
    %147 = math.tanh %146 : vector<1x32xf32>
    %148 = arith.mulf %143, %147 : vector<1x32xf32>
    %c6_45 = arith.constant 6 : index
    %c0_46 = arith.constant 0 : index
    %149 = vector.load %arg10[%c6_45, %c0_46] : memref<8x32xf32, #tpu.memory_space<vmem>>, vector<1x32xf32>
    tpu.vector_store %arg10[%c6_45, %c0_46], %148 {strides = array<i32>} : memref<8x32xf32, #tpu.memory_space<vmem>>, vector<1x32xf32>,
    %c7 = arith.constant 7 : index
    %c0_47 = arith.constant 0 : index
    %150 = vector.load %arg11[%c7, %c0_47] : memref<8x128xf32, #tpu.memory_space<vmem>>, vector<1x128xf32>
    %cst_48 = arith.constant dense<0.000000e+00> : vector<1x128xf32>
    %151 = tpu.matmul %148, %1, %cst_48 {dimension_numbers = #tpu.dot_dimension_numbers<[1], [0], [0], [1], [0, 0, 1, 1], [], []>} : vector<1x32xf32>, vector<32x128xf32>, vector<1x128xf32> -> vector<1x128xf32>
    %152 = arith.addf %150, %151 : vector<1x128xf32>
    %153 = vector.extract_strided_slice %152 {offsets = [0, 0], sizes = [1, 96], strides = [1, 1]} : vector<1x128xf32> to vector<1x96xf32>
    %154 = arith.negf %153 : vector<1x96xf32>
    %155 = math.exp %154 : vector<1x96xf32>
    %cst_49 = arith.constant 1.000000e+00 : f32
    %156 = vector.broadcast %cst_49 : f32 to vector<1x96xf32>
    %157 = arith.addf %156, %155 : vector<1x96xf32>
    %158 = arith.divf %156, %157 : vector<1x96xf32>
    %159 = vector.extract_strided_slice %152 {offsets = [0, 96], sizes = [1, 32], strides = [1, 1]} : vector<1x128xf32> to vector<1x32xf32>
    %160 = math.tanh %159 : vector<1x32xf32>
    %161 = vector.extract_strided_slice %158 {offsets = [0, 0], sizes = [1, 32], strides = [1, 1]} : vector<1x96xf32> to vector<1x32xf32>
    %162 = vector.extract_strided_slice %158 {offsets = [0, 32], sizes = [1, 32], strides = [1, 1]} : vector<1x96xf32> to vector<1x32xf32>
    %163 = vector.extract_strided_slice %158 {offsets = [0, 64], sizes = [1, 32], strides = [1, 1]} : vector<1x96xf32> to vector<1x32xf32>
    %164 = arith.mulf %162, %146 : vector<1x32xf32>
    %165 = arith.mulf %161, %160 : vector<1x32xf32>
    %166 = arith.addf %164, %165 : vector<1x32xf32>
    %167 = math.tanh %166 : vector<1x32xf32>
    %168 = arith.mulf %163, %167 : vector<1x32xf32>
    %c7_50 = arith.constant 7 : index
    %c0_51 = arith.constant 0 : index
    %169 = vector.load %arg10[%c7_50, %c0_51] : memref<8x32xf32, #tpu.memory_space<vmem>>, vector<1x32xf32>
    tpu.vector_store %arg10[%c7_50, %c0_51], %168 {strides = array<i32>} : memref<8x32xf32, #tpu.memory_space<vmem>>, vector<1x32xf32>,
    %c0_52 = arith.constant 0 : index
    %c0_53 = arith.constant 0 : index
    %170 = vector.load %arg4[%c0_52, %c0_53] : memref<32x128xf32, #tpu.memory_space<vmem>>, vector<32x128xf32>
    %c0_54 = arith.constant 0 : index
    %c0_55 = arith.constant 0 : index
    %171 = vector.load %arg5[%c0_54, %c0_55] : memref<32x128xf32, #tpu.memory_space<vmem>>, vector<32x128xf32>
    %c0_56 = arith.constant 0 : index
    %c0_57 = arith.constant 0 : index
    %172 = vector.load %arg6[%c0_56, %c0_57] : memref<1x128xf32, #tpu.memory_space<vmem>>, vector<1x128xf32>
    %c0_58 = arith.constant 0 : index
    %c0_59 = arith.constant 0 : index
    %173 = vector.load %arg10[%c0_58, %c0_59] : memref<8x32xf32, #tpu.memory_space<vmem>>, vector<8x32xf32>
    %cst_60 = arith.constant dense<0.000000e+00> : vector<8x128xf32>
    %174 = tpu.matmul %173, %170, %cst_60 {dimension_numbers = #tpu.dot_dimension_numbers<[1], [0], [0], [1], [0, 0, 1, 1], [], []>} : vector<8x32xf32>, vector<32x128xf32>, vector<8x128xf32> -> vector<8x128xf32>
    %175 = vector.broadcast %172 : vector<1x128xf32> to vector<8x128xf32>
    %176 = arith.addf %174, %175 : vector<8x128xf32>
    %c0_61 = arith.constant 0 : index
    %c0_62 = arith.constant 0 : index
    %177 = vector.load %arg11[%c0_61, %c0_62] : memref<8x128xf32, #tpu.memory_space<vmem>>, vector<8x128xf32>
    tpu.vector_store %arg11[%c0_61, %c0_62], %176 {strides = array<i32>} : memref<8x128xf32, #tpu.memory_space<vmem>>, vector<8x128xf32>,
    %cst_63 = arith.constant 0.000000e+00 : f32
    %178 = vector.broadcast %cst_63 : f32 to vector<1x32xf32>
    %cst_64 = arith.constant 0.000000e+00 : f32
    %179 = vector.broadcast %cst_64 : f32 to vector<1x32xf32>
    %c0_65 = arith.constant 0 : index
    %c0_66 = arith.constant 0 : index
    %180 = vector.load %arg11[%c0_65, %c0_66] : memref<8x128xf32, #tpu.memory_space<vmem>>, vector<1x128xf32>
    %cst_67 = arith.constant dense<0.000000e+00> : vector<1x128xf32>
    %181 = tpu.matmul %178, %171, %cst_67 {dimension_numbers = #tpu.dot_dimension_numbers<[1], [0], [0], [1], [0, 0, 1, 1], [], []>} : vector<1x32xf32>, vector<32x128xf32>, vector<1x128xf32> -> vector<1x128xf32>
    %182 = arith.addf %180, %181 : vector<1x128xf32>
    %183 = vector.extract_strided_slice %182 {offsets = [0, 0], sizes = [1, 96], strides = [1, 1]} : vector<1x128xf32> to vector<1x96xf32>
    %184 = arith.negf %183 : vector<1x96xf32>
    %185 = math.exp %184 : vector<1x96xf32>
    %cst_68 = arith.constant 1.000000e+00 : f32
    %186 = vector.broadcast %cst_68 : f32 to vector<1x96xf32>
    %187 = arith.addf %186, %185 : vector<1x96xf32>
    %188 = arith.divf %186, %187 : vector<1x96xf32>
    %189 = vector.extract_strided_slice %182 {offsets = [0, 96], sizes = [1, 32], strides = [1, 1]} : vector<1x128xf32> to vector<1x32xf32>
    %190 = math.tanh %189 : vector<1x32xf32>
    %191 = vector.extract_strided_slice %188 {offsets = [0, 0], sizes = [1, 32], strides = [1, 1]} : vector<1x96xf32> to vector<1x32xf32>
    %192 = vector.extract_strided_slice %188 {offsets = [0, 32], sizes = [1, 32], strides = [1, 1]} : vector<1x96xf32> to vector<1x32xf32>
    %193 = vector.extract_strided_slice %188 {offsets = [0, 64], sizes = [1, 32], strides = [1, 1]} : vector<1x96xf32> to vector<1x32xf32>
    %194 = arith.mulf %192, %179 : vector<1x32xf32>
    %195 = arith.mulf %191, %190 : vector<1x32xf32>
    %196 = arith.addf %194, %195 : vector<1x32xf32>
    %197 = math.tanh %196 : vector<1x32xf32>
    %198 = arith.mulf %193, %197 : vector<1x32xf32>
    %c0_69 = arith.constant 0 : index
    %c0_70 = arith.constant 0 : index
    %199 = vector.load %arg10[%c0_69, %c0_70] : memref<8x32xf32, #tpu.memory_space<vmem>>, vector<1x32xf32>
    tpu.vector_store %arg10[%c0_69, %c0_70], %198 {strides = array<i32>} : memref<8x32xf32, #tpu.memory_space<vmem>>, vector<1x32xf32>,
    %c1_71 = arith.constant 1 : index
    %c0_72 = arith.constant 0 : index
    %200 = vector.load %arg11[%c1_71, %c0_72] : memref<8x128xf32, #tpu.memory_space<vmem>>, vector<1x128xf32>
    %cst_73 = arith.constant dense<0.000000e+00> : vector<1x128xf32>
    %201 = tpu.matmul %198, %171, %cst_73 {dimension_numbers = #tpu.dot_dimension_numbers<[1], [0], [0], [1], [0, 0, 1, 1], [], []>} : vector<1x32xf32>, vector<32x128xf32>, vector<1x128xf32> -> vector<1x128xf32>
    %202 = arith.addf %200, %201 : vector<1x128xf32>
    %203 = vector.extract_strided_slice %202 {offsets = [0, 0], sizes = [1, 96], strides = [1, 1]} : vector<1x128xf32> to vector<1x96xf32>
    %204 = arith.negf %203 : vector<1x96xf32>
    %205 = math.exp %204 : vector<1x96xf32>
    %cst_74 = arith.constant 1.000000e+00 : f32
    %206 = vector.broadcast %cst_74 : f32 to vector<1x96xf32>
    %207 = arith.addf %206, %205 : vector<1x96xf32>
    %208 = arith.divf %206, %207 : vector<1x96xf32>
    %209 = vector.extract_strided_slice %202 {offsets = [0, 96], sizes = [1, 32], strides = [1, 1]} : vector<1x128xf32> to vector<1x32xf32>
    %210 = math.tanh %209 : vector<1x32xf32>
    %211 = vector.extract_strided_slice %208 {offsets = [0, 0], sizes = [1, 32], strides = [1, 1]} : vector<1x96xf32> to vector<1x32xf32>
    %212 = vector.extract_strided_slice %208 {offsets = [0, 32], sizes = [1, 32], strides = [1, 1]} : vector<1x96xf32> to vector<1x32xf32>
    %213 = vector.extract_strided_slice %208 {offsets = [0, 64], sizes = [1, 32], strides = [1, 1]} : vector<1x96xf32> to vector<1x32xf32>
    %214 = arith.mulf %212, %196 : vector<1x32xf32>
    %215 = arith.mulf %211, %210 : vector<1x32xf32>
    %216 = arith.addf %214, %215 : vector<1x32xf32>
    %217 = math.tanh %216 : vector<1x32xf32>
    %218 = arith.mulf %213, %217 : vector<1x32xf32>
    %c1_75 = arith.constant 1 : index
    %c0_76 = arith.constant 0 : index
    %219 = vector.load %arg10[%c1_75, %c0_76] : memref<8x32xf32, #tpu.memory_space<vmem>>, vector<1x32xf32>
    tpu.vector_store %arg10[%c1_75, %c0_76], %218 {strides = array<i32>} : memref<8x32xf32, #tpu.memory_space<vmem>>, vector<1x32xf32>,
    %c2_77 = arith.constant 2 : index
    %c0_78 = arith.constant 0 : index
    %220 = vector.load %arg11[%c2_77, %c0_78] : memref<8x128xf32, #tpu.memory_space<vmem>>, vector<1x128xf32>
    %cst_79 = arith.constant dense<0.000000e+00> : vector<1x128xf32>
    %221 = tpu.matmul %218, %171, %cst_79 {dimension_numbers = #tpu.dot_dimension_numbers<[1], [0], [0], [1], [0, 0, 1, 1], [], []>} : vector<1x32xf32>, vector<32x128xf32>, vector<1x128xf32> -> vector<1x128xf32>
    %222 = arith.addf %220, %221 : vector<1x128xf32>
    %223 = vector.extract_strided_slice %222 {offsets = [0, 0], sizes = [1, 96], strides = [1, 1]} : vector<1x128xf32> to vector<1x96xf32>
    %224 = arith.negf %223 : vector<1x96xf32>
    %225 = math.exp %224 : vector<1x96xf32>
    %cst_80 = arith.constant 1.000000e+00 : f32
    %226 = vector.broadcast %cst_80 : f32 to vector<1x96xf32>
    %227 = arith.addf %226, %225 : vector<1x96xf32>
    %228 = arith.divf %226, %227 : vector<1x96xf32>
    %229 = vector.extract_strided_slice %222 {offsets = [0, 96], sizes = [1, 32], strides = [1, 1]} : vector<1x128xf32> to vector<1x32xf32>
    %230 = math.tanh %229 : vector<1x32xf32>
    %231 = vector.extract_strided_slice %228 {offsets = [0, 0], sizes = [1, 32], strides = [1, 1]} : vector<1x96xf32> to vector<1x32xf32>
    %232 = vector.extract_strided_slice %228 {offsets = [0, 32], sizes = [1, 32], strides = [1, 1]} : vector<1x96xf32> to vector<1x32xf32>
    %233 = vector.extract_strided_slice %228 {offsets = [0, 64], sizes = [1, 32], strides = [1, 1]} : vector<1x96xf32> to vector<1x32xf32>
    %234 = arith.mulf %232, %216 : vector<1x32xf32>
    %235 = arith.mulf %231, %230 : vector<1x32xf32>
    %236 = arith.addf %234, %235 : vector<1x32xf32>
    %237 = math.tanh %236 : vector<1x32xf32>
    %238 = arith.mulf %233, %237 : vector<1x32xf32>
    %c2_81 = arith.constant 2 : index
    %c0_82 = arith.constant 0 : index
    %239 = vector.load %arg10[%c2_81, %c0_82] : memref<8x32xf32, #tpu.memory_space<vmem>>, vector<1x32xf32>
    tpu.vector_store %arg10[%c2_81, %c0_82], %238 {strides = array<i32>} : memref<8x32xf32, #tpu.memory_space<vmem>>, vector<1x32xf32>,
    %c3_83 = arith.constant 3 : index
    %c0_84 = arith.constant 0 : index
    %240 = vector.load %arg11[%c3_83, %c0_84] : memref<8x128xf32, #tpu.memory_space<vmem>>, vector<1x128xf32>
    %cst_85 = arith.constant dense<0.000000e+00> : vector<1x128xf32>
    %241 = tpu.matmul %238, %171, %cst_85 {dimension_numbers = #tpu.dot_dimension_numbers<[1], [0], [0], [1], [0, 0, 1, 1], [], []>} : vector<1x32xf32>, vector<32x128xf32>, vector<1x128xf32> -> vector<1x128xf32>
    %242 = arith.addf %240, %241 : vector<1x128xf32>
    %243 = vector.extract_strided_slice %242 {offsets = [0, 0], sizes = [1, 96], strides = [1, 1]} : vector<1x128xf32> to vector<1x96xf32>
    %244 = arith.negf %243 : vector<1x96xf32>
    %245 = math.exp %244 : vector<1x96xf32>
    %cst_86 = arith.constant 1.000000e+00 : f32
    %246 = vector.broadcast %cst_86 : f32 to vector<1x96xf32>
    %247 = arith.addf %246, %245 : vector<1x96xf32>
    %248 = arith.divf %246, %247 : vector<1x96xf32>
    %249 = vector.extract_strided_slice %242 {offsets = [0, 96], sizes = [1, 32], strides = [1, 1]} : vector<1x128xf32> to vector<1x32xf32>
    %250 = math.tanh %249 : vector<1x32xf32>
    %251 = vector.extract_strided_slice %248 {offsets = [0, 0], sizes = [1, 32], strides = [1, 1]} : vector<1x96xf32> to vector<1x32xf32>
    %252 = vector.extract_strided_slice %248 {offsets = [0, 32], sizes = [1, 32], strides = [1, 1]} : vector<1x96xf32> to vector<1x32xf32>
    %253 = vector.extract_strided_slice %248 {offsets = [0, 64], sizes = [1, 32], strides = [1, 1]} : vector<1x96xf32> to vector<1x32xf32>
    %254 = arith.mulf %252, %236 : vector<1x32xf32>
    %255 = arith.mulf %251, %250 : vector<1x32xf32>
    %256 = arith.addf %254, %255 : vector<1x32xf32>
    %257 = math.tanh %256 : vector<1x32xf32>
    %258 = arith.mulf %253, %257 : vector<1x32xf32>
    %c3_87 = arith.constant 3 : index
    %c0_88 = arith.constant 0 : index
    %259 = vector.load %arg10[%c3_87, %c0_88] : memref<8x32xf32, #tpu.memory_space<vmem>>, vector<1x32xf32>
    tpu.vector_store %arg10[%c3_87, %c0_88], %258 {strides = array<i32>} : memref<8x32xf32, #tpu.memory_space<vmem>>, vector<1x32xf32>,
    %c4_89 = arith.constant 4 : index
    %c0_90 = arith.constant 0 : index
    %260 = vector.load %arg11[%c4_89, %c0_90] : memref<8x128xf32, #tpu.memory_space<vmem>>, vector<1x128xf32>
    %cst_91 = arith.constant dense<0.000000e+00> : vector<1x128xf32>
    %261 = tpu.matmul %258, %171, %cst_91 {dimension_numbers = #tpu.dot_dimension_numbers<[1], [0], [0], [1], [0, 0, 1, 1], [], []>} : vector<1x32xf32>, vector<32x128xf32>, vector<1x128xf32> -> vector<1x128xf32>
    %262 = arith.addf %260, %261 : vector<1x128xf32>
    %263 = vector.extract_strided_slice %262 {offsets = [0, 0], sizes = [1, 96], strides = [1, 1]} : vector<1x128xf32> to vector<1x96xf32>
    %264 = arith.negf %263 : vector<1x96xf32>
    %265 = math.exp %264 : vector<1x96xf32>
    %cst_92 = arith.constant 1.000000e+00 : f32
    %266 = vector.broadcast %cst_92 : f32 to vector<1x96xf32>
    %267 = arith.addf %266, %265 : vector<1x96xf32>
    %268 = arith.divf %266, %267 : vector<1x96xf32>
    %269 = vector.extract_strided_slice %262 {offsets = [0, 96], sizes = [1, 32], strides = [1, 1]} : vector<1x128xf32> to vector<1x32xf32>
    %270 = math.tanh %269 : vector<1x32xf32>
    %271 = vector.extract_strided_slice %268 {offsets = [0, 0], sizes = [1, 32], strides = [1, 1]} : vector<1x96xf32> to vector<1x32xf32>
    %272 = vector.extract_strided_slice %268 {offsets = [0, 32], sizes = [1, 32], strides = [1, 1]} : vector<1x96xf32> to vector<1x32xf32>
    %273 = vector.extract_strided_slice %268 {offsets = [0, 64], sizes = [1, 32], strides = [1, 1]} : vector<1x96xf32> to vector<1x32xf32>
    %274 = arith.mulf %272, %256 : vector<1x32xf32>
    %275 = arith.mulf %271, %270 : vector<1x32xf32>
    %276 = arith.addf %274, %275 : vector<1x32xf32>
    %277 = math.tanh %276 : vector<1x32xf32>
    %278 = arith.mulf %273, %277 : vector<1x32xf32>
    %c4_93 = arith.constant 4 : index
    %c0_94 = arith.constant 0 : index
    %279 = vector.load %arg10[%c4_93, %c0_94] : memref<8x32xf32, #tpu.memory_space<vmem>>, vector<1x32xf32>
    tpu.vector_store %arg10[%c4_93, %c0_94], %278 {strides = array<i32>} : memref<8x32xf32, #tpu.memory_space<vmem>>, vector<1x32xf32>,
    %c5_95 = arith.constant 5 : index
    %c0_96 = arith.constant 0 : index
    %280 = vector.load %arg11[%c5_95, %c0_96] : memref<8x128xf32, #tpu.memory_space<vmem>>, vector<1x128xf32>
    %cst_97 = arith.constant dense<0.000000e+00> : vector<1x128xf32>
    %281 = tpu.matmul %278, %171, %cst_97 {dimension_numbers = #tpu.dot_dimension_numbers<[1], [0], [0], [1], [0, 0, 1, 1], [], []>} : vector<1x32xf32>, vector<32x128xf32>, vector<1x128xf32> -> vector<1x128xf32>
    %282 = arith.addf %280, %281 : vector<1x128xf32>
    %283 = vector.extract_strided_slice %282 {offsets = [0, 0], sizes = [1, 96], strides = [1, 1]} : vector<1x128xf32> to vector<1x96xf32>
    %284 = arith.negf %283 : vector<1x96xf32>
    %285 = math.exp %284 : vector<1x96xf32>
    %cst_98 = arith.constant 1.000000e+00 : f32
    %286 = vector.broadcast %cst_98 : f32 to vector<1x96xf32>
    %287 = arith.addf %286, %285 : vector<1x96xf32>
    %288 = arith.divf %286, %287 : vector<1x96xf32>
    %289 = vector.extract_strided_slice %282 {offsets = [0, 96], sizes = [1, 32], strides = [1, 1]} : vector<1x128xf32> to vector<1x32xf32>
    %290 = math.tanh %289 : vector<1x32xf32>
    %291 = vector.extract_strided_slice %288 {offsets = [0, 0], sizes = [1, 32], strides = [1, 1]} : vector<1x96xf32> to vector<1x32xf32>
    %292 = vector.extract_strided_slice %288 {offsets = [0, 32], sizes = [1, 32], strides = [1, 1]} : vector<1x96xf32> to vector<1x32xf32>
    %293 = vector.extract_strided_slice %288 {offsets = [0, 64], sizes = [1, 32], strides = [1, 1]} : vector<1x96xf32> to vector<1x32xf32>
    %294 = arith.mulf %292, %276 : vector<1x32xf32>
    %295 = arith.mulf %291, %290 : vector<1x32xf32>
    %296 = arith.addf %294, %295 : vector<1x32xf32>
    %297 = math.tanh %296 : vector<1x32xf32>
    %298 = arith.mulf %293, %297 : vector<1x32xf32>
    %c5_99 = arith.constant 5 : index
    %c0_100 = arith.constant 0 : index
    %299 = vector.load %arg10[%c5_99, %c0_100] : memref<8x32xf32, #tpu.memory_space<vmem>>, vector<1x32xf32>
    tpu.vector_store %arg10[%c5_99, %c0_100], %298 {strides = array<i32>} : memref<8x32xf32, #tpu.memory_space<vmem>>, vector<1x32xf32>,
    %c6_101 = arith.constant 6 : index
    %c0_102 = arith.constant 0 : index
    %300 = vector.load %arg11[%c6_101, %c0_102] : memref<8x128xf32, #tpu.memory_space<vmem>>, vector<1x128xf32>
    %cst_103 = arith.constant dense<0.000000e+00> : vector<1x128xf32>
    %301 = tpu.matmul %298, %171, %cst_103 {dimension_numbers = #tpu.dot_dimension_numbers<[1], [0], [0], [1], [0, 0, 1, 1], [], []>} : vector<1x32xf32>, vector<32x128xf32>, vector<1x128xf32> -> vector<1x128xf32>
    %302 = arith.addf %300, %301 : vector<1x128xf32>
    %303 = vector.extract_strided_slice %302 {offsets = [0, 0], sizes = [1, 96], strides = [1, 1]} : vector<1x128xf32> to vector<1x96xf32>
    %304 = arith.negf %303 : vector<1x96xf32>
    %305 = math.exp %304 : vector<1x96xf32>
    %cst_104 = arith.constant 1.000000e+00 : f32
    %306 = vector.broadcast %cst_104 : f32 to vector<1x96xf32>
    %307 = arith.addf %306, %305 : vector<1x96xf32>
    %308 = arith.divf %306, %307 : vector<1x96xf32>
    %309 = vector.extract_strided_slice %302 {offsets = [0, 96], sizes = [1, 32], strides = [1, 1]} : vector<1x128xf32> to vector<1x32xf32>
    %310 = math.tanh %309 : vector<1x32xf32>
    %311 = vector.extract_strided_slice %308 {offsets = [0, 0], sizes = [1, 32], strides = [1, 1]} : vector<1x96xf32> to vector<1x32xf32>
    %312 = vector.extract_strided_slice %308 {offsets = [0, 32], sizes = [1, 32], strides = [1, 1]} : vector<1x96xf32> to vector<1x32xf32>
    %313 = vector.extract_strided_slice %308 {offsets = [0, 64], sizes = [1, 32], strides = [1, 1]} : vector<1x96xf32> to vector<1x32xf32>
    %314 = arith.mulf %312, %296 : vector<1x32xf32>
    %315 = arith.mulf %311, %310 : vector<1x32xf32>
    %316 = arith.addf %314, %315 : vector<1x32xf32>
    %317 = math.tanh %316 : vector<1x32xf32>
    %318 = arith.mulf %313, %317 : vector<1x32xf32>
    %c6_105 = arith.constant 6 : index
    %c0_106 = arith.constant 0 : index
    %319 = vector.load %arg10[%c6_105, %c0_106] : memref<8x32xf32, #tpu.memory_space<vmem>>, vector<1x32xf32>
    tpu.vector_store %arg10[%c6_105, %c0_106], %318 {strides = array<i32>} : memref<8x32xf32, #tpu.memory_space<vmem>>, vector<1x32xf32>,
    %c7_107 = arith.constant 7 : index
    %c0_108 = arith.constant 0 : index
    %320 = vector.load %arg11[%c7_107, %c0_108] : memref<8x128xf32, #tpu.memory_space<vmem>>, vector<1x128xf32>
    %cst_109 = arith.constant dense<0.000000e+00> : vector<1x128xf32>
    %321 = tpu.matmul %318, %171, %cst_109 {dimension_numbers = #tpu.dot_dimension_numbers<[1], [0], [0], [1], [0, 0, 1, 1], [], []>} : vector<1x32xf32>, vector<32x128xf32>, vector<1x128xf32> -> vector<1x128xf32>
    %322 = arith.addf %320, %321 : vector<1x128xf32>
    %323 = vector.extract_strided_slice %322 {offsets = [0, 0], sizes = [1, 96], strides = [1, 1]} : vector<1x128xf32> to vector<1x96xf32>
    %324 = arith.negf %323 : vector<1x96xf32>
    %325 = math.exp %324 : vector<1x96xf32>
    %cst_110 = arith.constant 1.000000e+00 : f32
    %326 = vector.broadcast %cst_110 : f32 to vector<1x96xf32>
    %327 = arith.addf %326, %325 : vector<1x96xf32>
    %328 = arith.divf %326, %327 : vector<1x96xf32>
    %329 = vector.extract_strided_slice %322 {offsets = [0, 96], sizes = [1, 32], strides = [1, 1]} : vector<1x128xf32> to vector<1x32xf32>
    %330 = math.tanh %329 : vector<1x32xf32>
    %331 = vector.extract_strided_slice %328 {offsets = [0, 0], sizes = [1, 32], strides = [1, 1]} : vector<1x96xf32> to vector<1x32xf32>
    %332 = vector.extract_strided_slice %328 {offsets = [0, 32], sizes = [1, 32], strides = [1, 1]} : vector<1x96xf32> to vector<1x32xf32>
    %333 = vector.extract_strided_slice %328 {offsets = [0, 64], sizes = [1, 32], strides = [1, 1]} : vector<1x96xf32> to vector<1x32xf32>
    %334 = arith.mulf %332, %316 : vector<1x32xf32>
    %335 = arith.mulf %331, %330 : vector<1x32xf32>
    %336 = arith.addf %334, %335 : vector<1x32xf32>
    %337 = math.tanh %336 : vector<1x32xf32>
    %338 = arith.mulf %333, %337 : vector<1x32xf32>
    %c7_111 = arith.constant 7 : index
    %c0_112 = arith.constant 0 : index
    %339 = vector.load %arg10[%c7_111, %c0_112] : memref<8x32xf32, #tpu.memory_space<vmem>>, vector<1x32xf32>
    tpu.vector_store %arg10[%c7_111, %c0_112], %338 {strides = array<i32>} : memref<8x32xf32, #tpu.memory_space<vmem>>, vector<1x32xf32>,
    %c0_113 = arith.constant 0 : index
    %c0_114 = arith.constant 0 : index
    %340 = vector.load %arg10[%c0_113, %c0_114] : memref<8x32xf32, #tpu.memory_space<vmem>>, vector<8x32xf32>
    %cst_115 = arith.constant 0.000000e+00 : f32
    %341 = vector.broadcast %cst_115 : f32 to vector<8x32xf32>
    %342 = arith.maximumf %340, %341 : vector<8x32xf32>
    %c0_116 = arith.constant 0 : index
    %c0_117 = arith.constant 0 : index
    %343 = vector.load %arg7[%c0_116, %c0_117] : memref<32x128xf32, #tpu.memory_space<vmem>>, vector<32x128xf32>
    %cst_118 = arith.constant dense<0.000000e+00> : vector<8x128xf32>
    %344 = tpu.matmul %342, %343, %cst_118 {dimension_numbers = #tpu.dot_dimension_numbers<[1], [0], [0], [1], [0, 0, 1, 1], [], []>} : vector<8x32xf32>, vector<32x128xf32>, vector<8x128xf32> -> vector<8x128xf32>
    %c0_119 = arith.constant 0 : index
    %c0_120 = arith.constant 0 : index
    %345 = vector.load %arg8[%c0_119, %c0_120] : memref<1x128xf32, #tpu.memory_space<vmem>>, vector<1x128xf32>
    %346 = vector.broadcast %345 : vector<1x128xf32> to vector<8x128xf32>
    %347 = arith.addf %344, %346 : vector<8x128xf32>
    %c0_121 = arith.constant 0 : index
    %c0_122 = arith.constant 0 : index
    %348 = vector.load %arg9[%c0_121, %c0_122] : memref<8x128xf32, #tpu.memory_space<vmem>>, vector<8x128xf32>
    tpu.vector_store %arg9[%c0_121, %c0_122], %347 {strides = array<i32>} : memref<8x128xf32, #tpu.memory_space<vmem>>, vector<8x128xf32>,
    return
  }
}

</mosaic_0001>

<bundles_post_ra>
// kernel: tpu_custom_call.1
= control target key start
LH: loop header
LB: loop body
LE: loop exit
PB: predicated region body
PF: predicated region fallthrough
CT: control target
= control target key end

     0   :  { %14 = vsyncpa [#allocation5], 0  ;;  %s3069_s0 = inlined_call_operand.hbm [shape: f32[8,16], index: 0, kind: input, shape index: {}]   ;;  %s3070_s1 = inlined_call_operand.hbm [shape: f32[16,128], index: 1, kind: input, shape index: {}]   ;;  %s3071_s2 = inlined_call_operand.hbm [shape: f32[32,128], index: 2, kind: input, shape index: {}]   ;;  %s3072_s3 = inlined_call_operand.vmem [shape: f32[1,128], index: 3, kind: input, shape index: {}]   ;;  %s3073_s4 = inlined_call_operand.hbm [shape: f32[32,128], index: 4, kind: input, shape index: {}]   ;;  %s3074_s5 = inlined_call_operand.hbm [shape: f32[32,128], index: 5, kind: input, shape index: {}]   ;;  %s3075_s6 = inlined_call_operand.vmem [shape: f32[1,128], index: 6, kind: input, shape index: {}]   ;;  %s3076_s7 = inlined_call_operand.hbm [shape: f32[32,128], index: 7, kind: input, shape index: {}]   ;;  %s3077_s8 = inlined_call_operand.vmem [shape: f32[1,128], index: 8, kind: input, shape index: {}]   ;;  %s3078_s9 = inlined_call_operand.hbm [shape: f32[8,128], index: 9, kind: output, shape index: {}]  }
   0x1   :  { %15 = vsyncpa [#allocation8], 0 }
   0x2   :  { %16 = vsyncpa [#allocation11], 0 }
   0x3   :  { %17 = vsyncpa [#allocation14], 0 }
   0x4   :  { %18 = vsyncpa [#allocation6], 0  ;;  %s2671_s30 = smov [#allocation7]  }
   0x5   :  { %s34_s10 = sshll.u32 %s2671_s30, 4  ;;  %s35_s10 = int_to_ptr.vmem [resolvable:$true] %s34_s10 }
   0x6   :  { %s2529_s11 = scalar_lea.vmem %s35_s10, 256  ;;  %p2534_p1 = scmp.lt.s32.totalorder %s35_s10, %s35_s10 }
   0x7   :  { %p2530_p0 = scmp.ne.s32.totalorder %s35_s10, %s2529_s11  ;;  %p2535_p2 = scmp.lt.s32.totalorder %s2529_s11, %s2529_s11 }
   0x9   :  { %p2536_p3 = por %p2535_p2, %p2534_p1 }
   0xb   :  { %p2537_p4 = pnand %p2536_p3, %p2530_p0 }
   0xd   :  { %2540 = shalt.err (!%p2537_p4)
}
   0xe   :  { %s2672_s12 = smov 128   ;;  %s2673_s13 = smov 8  }
   0xf   :  { %40 = dma.hbm_to_vmem [thread:$0]  %s3070_s1, 256, %s35_s10, [#allocation8], %s2672_s12, %s2672_s12, %s2673_s13  }
  0x10   :  { %s2674_s16 = smov [#allocation10]   ;;  %s2675_s18 = smov [#allocation4]  }
  0x11   :  { %s60_s17 = sshll.u32 %s2674_s16, 4  ;;  %s25_s19 = sshll.u32 %s2675_s18, 4  ;;  %s61_s17 = int_to_ptr.vmem [resolvable:$true] %s60_s17  ;;  %s26_s19 = int_to_ptr.vmem [resolvable:$true] %s25_s19 }
  0x12   :  { %s2549_s20 = scalar_lea.vmem %s61_s17, 512  ;;  %p2554_p6 = scmp.lt.s32.totalorder %s61_s17, %s61_s17 }
  0x13   :  { %p2550_p5 = scmp.ne.s32.totalorder %s61_s17, %s2549_s20  ;;  %p2555_p7 = scmp.lt.s32.totalorder %s2549_s20, %s2549_s20 }
  0x15   :  { %p2556_p8 = por %p2555_p7, %p2554_p6 }
  0x17   :  { %p2557_p9 = pnand %p2556_p8, %p2550_p5 }
  0x19   :  { %2560 = shalt.err (!%p2557_p9)
}
  0x1a   :  { %66 = dma.hbm_to_vmem [thread:$0]  %s3073_s4, 512, %s61_s17, [#allocation11], %s2672_s12, %s2672_s12, %s2673_s13  }
  0x1b   :  { %s2569_s1 = scalar_lea.vmem %s26_s19, 128  ;;  %p2574_p11 = scmp.lt.s32.totalorder %s26_s19, %s26_s19 }
  0x1c   :  { %p2570_p10 = scmp.ne.s32.totalorder %s26_s19, %s2569_s1  ;;  %p2575_p12 = scmp.lt.s32.totalorder %s2569_s1, %s2569_s1 }
  0x1e   :  { %p2576_p13 = por %p2575_p12, %p2574_p11 }
  0x20   :  { %p2577_p0 = pnand %p2576_p13, %p2570_p10 }
  0x22   :  { %2580 = shalt.err (!%p2577_p0)
}
  0x23   :  { %28 = dma.hbm_to_vmem [thread:$0]  %s3069_s0, 128, %s26_s19, [#allocation5]  }
  0x24   :  { %s2676_s25 = smov [#allocation9]   ;;  %s2677_s27 = smov [#allocation12]  }
  0x25   :  { %s46_s26 = sshll.u32 %s2676_s25, 4  ;;  %s72_s28 = sshll.u32 %s2677_s27, 4  ;;  %s47_s26 = int_to_ptr.vmem [resolvable:$true] %s46_s26  ;;  %s73_s28 = int_to_ptr.vmem [resolvable:$true] %s72_s28 }
  0x26   :  { %s2589_s29 = scalar_lea.vmem %s47_s26, 512  ;;  %p2594_p2 = scmp.lt.s32.totalorder %s47_s26, %s47_s26 }
  0x27   :  { %p2590_p1 = scmp.ne.s32.totalorder %s47_s26, %s2589_s29  ;;  %p2595_p3 = scmp.lt.s32.totalorder %s2589_s29, %s2589_s29 }
  0x29   :  { %p2596_p4 = por %p2595_p3, %p2594_p2 }
  0x2b   :  { %p2597_p5 = pnand %p2596_p4, %p2590_p1 }
  0x2d   :  { %2600 = shalt.err (!%p2597_p5)
}
  0x2e   :  { %52 = dma.hbm_to_vmem [thread:$0]  %s3071_s2, 512, %s47_s26, [#allocation8], %s2672_s12, %s2672_s12, %s2673_s13  }
  0x2f   :  { %s2609_s0 = scalar_lea.vmem %s73_s28, 512  ;;  %p2614_p7 = scmp.lt.s32.totalorder %s73_s28, %s73_s28 }
  0x30   :  { %p2610_p6 = scmp.ne.s32.totalorder %s73_s28, %s2609_s0  ;;  %p2615_p8 = scmp.lt.s32.totalorder %s2609_s0, %s2609_s0 }
  0x32   :  { %p2616_p9 = por %p2615_p8, %p2614_p7 }
  0x34   :  { %p2617_p10 = pnand %p2616_p9, %p2610_p6 }
  0x36   :  { %2620 = shalt.err (!%p2617_p10)
}
  0x37   :  { %78 = dma.hbm_to_vmem [thread:$0]  %s3074_s5, 512, %s73_s28, [#allocation11], %s2672_s12, %s2672_s12, %s2673_s13  }
  0x38   :  { %s2678_s14 = smov [#allocation13]  }
  0x39   :  { %s86_s15 = sshll.u32 %s2678_s14, 4  ;;  %s87_s15 = int_to_ptr.vmem [resolvable:$true] %s86_s15 }
  0x3a   :  { %s2629_s16 = scalar_lea.vmem %s87_s15, 512  ;;  %p2634_p12 = scmp.lt.s32.totalorder %s87_s15, %s87_s15 }
  0x3b   :  { %p2630_p11 = scmp.ne.s32.totalorder %s87_s15, %s2629_s16  ;;  %p2635_p13 = scmp.lt.s32.totalorder %s2629_s16, %s2629_s16 }
  0x3d   :  { %p2636_p0 = por %p2635_p13, %p2634_p12 }
  0x3f   :  { %p2637_p1 = pnand %p2636_p0, %p2630_p11 }
  0x41   :  { %2640 = shalt.err (!%p2637_p1)
}
  0x42   :  { %92 = dma.hbm_to_vmem [thread:$0]  %s3076_s7, 512, %s87_s15, [#allocation14], %s2672_s12, %s2672_s12, %s2673_s13  }
  0x43   :  { %2661 = dma.done.wait [#allocation5], 128  }
  0x44   :  { %2662 = vsyncadd [#allocation5], 4294967168 }
  0x45   :  { %2663 = dma.done.wait [#allocation8], 768  }
  0x46   :  { %2664 = vsyncadd [#allocation8], 4294966528 }
  0x47   :  { %2665 = dma.done.wait [#allocation11], 1024  }
  0x48   :  { %2666 = vsyncadd [#allocation11], 4294966272 }
  0x49   :  { %2667 = dma.done.wait [#allocation14], 512  }
  0x4a   :  { %2668 = vsyncadd [#allocation14], 4294966784  ;;  %v2679_v0 = vmov 0.0   ;;  %vm2680_vm0 = vmmov 0   ;;  %v114_v1 = vld [vmem:[#allocation7 + $0x8] sm:$0xff]  ;;  %v113_v2 = vld [vmem:[#allocation7] sm:$0xff] }
  0x4b   :  { %2175 = vmatprep.subr.mxu0 %v2679_v0  ;;  %2179 = vmatprep.mubr.msk.f32.mxu0 %vm2680_vm0, %v2679_v0  ;;  %v120_v3 = vld [vmem:[#allocation4] sm:$0xff]  ;;  %vm127_vm1 = vcmask 130048   ;;  %v2773_v4 = vld [vmem:[#allocation9 + $0x18] sm:$0xff]  ;;  %v2775_v5 = vld [vmem:[#allocation9 + $0x10] sm:$0xff]  ;;  %s2681_s12 = smov 32   ;;  %vm306_vm2 = vcmask 253952  }
  0x4c   :  { %2182 = vmatprep.subr.mxu1 %v2679_v0  ;;  %2190 = vmatprep.mubr.msk.f32.mxu1 %vm2680_vm0, %v2679_v0  ;;  %v2780_v6 = vld [vmem:[#allocation9 + $0x8] sm:$0xff]  ;;  %v2784_v7 = vld [vmem:[#allocation9] sm:$0xff]  ;;  %v2046_v8 = vld [vmem:[%s3072_s3] ss:$0 sm:$0xff]  ;;  %s2682_s3 = smov 64   ;;  %vm203_vm3 = vcmask 261120  }
  0x4d   :  { %2176 = vmatpush3.msra.mxu0 %v114_v1  ;;  %2183 = vmatpush3.msra.mxu1 %v2773_v4  ;;  %s2683_s20 = smov [#allocation15]  }
  0x4e   :  { %2177 = vmatprep.subr.mxu0 %v2679_v0  ;;  %2184 = vmatprep.subr.mxu1 %v2679_v0  ;;  %s2034_s21 = sshll.u32 %s2683_s20, 4  ;;  %s2035_s21 = int_to_ptr.vmem [resolvable:$true] %s2034_s21 }
  0x4f   :  { %2178 = vmatpush3.msra.mxu0 %v113_v2  ;;  %2185 = vmatpush3.msra.mxu1 %v2775_v5  ;;  %s2641_s22 = scalar_lea.vmem %s2035_s21, 128  ;;  %p2646_p3 = scmp.lt.s32.totalorder %s2035_s21, %s2035_s21 }
  0x50   :  { %2180 = vmatmul.mubr.msk.f32.vlgmr.msra.gmra.mxu0 %vm127_vm1, %v120_v3  ;;  %2186 = vmatprep.subr.mxu1 %v2679_v0  ;;  %p2642_p2 = scmp.ne.s32.totalorder %s2035_s21, %s2641_s22  ;;  %p2647_p4 = scmp.lt.s32.totalorder %s2641_s22, %s2641_s22 }
  0x51   :  { %2193 = vmatprep.subr.mxu0 %v2679_v0  ;;  %2187 = vmatpush3.msra.mxu1 %v2780_v6 }
  0x52   :  { %2194 = vmatpush3.msra.mxu0 %v2773_v4  ;;  %2188 = vmatprep.subr.mxu1 %v2679_v0  ;;  %p2648_p5 = por %p2647_p4, %p2646_p3 }
  0x53   :  { %2195 = vmatprep.subr.mxu0 %v2679_v0  ;;  %2189 = vmatpush3.msra.mxu1 %v2784_v7 }
  0x54   :  { %2196 = vmatpush3.msra.mxu0 %v2775_v5  ;;  %2191 = vmatmul.mubr.f32.vlgmr.msra.gmra.mxu1 %v2679_v0  ;;  %p2649_p6 = pnand %p2648_p5, %p2642_p2 }
  0x55   :  { %2197 = vmatprep.subr.mxu0 %v2679_v0  ;;  %2201 = vmatprep.mubr.msk.f32.mxu0 %vm2680_vm0, %v2679_v0 }
  0x56   :  { %2198 = vmatpush3.msra.mxu0 %v2780_v6  ;;  %2204 = vmatprep.subr.mxu1 %v2679_v0 }
  0x57   :  { %2199 = vmatprep.subr.mxu0 %v2679_v0  ;;  %2205 = vmatpush3.msra.mxu1 %v2773_v4 }
  0x58   :  { %2200 = vmatpush3.msra.mxu0 %v2784_v7  ;;  %2206 = vmatprep.subr.mxu1 %v2679_v0 }
  0x59   :  { %2212 = vmatprep.mubr.msk.f32.mxu1 %vm2680_vm0, %v2679_v0  ;;  %2207 = vmatpush3.msra.mxu1 %v2775_v5 }
  0x5a   :  { %2215 = vmatprep.subr.mxu0 %v2679_v0  ;;  %2208 = vmatprep.subr.mxu1 %v2679_v0 }
  0x5b   :  { %2209 = vmatpush3.msra.mxu1 %v2780_v6 }
  0x5c   :  { %2210 = vmatprep.subr.mxu1 %v2679_v0 }
  0x5d   :  { %2211 = vmatpush3.msra.mxu1 %v2784_v7 }
  0x5e   :  { %2226 = vmatprep.subr.mxu1 %v2679_v0 }
 0x110   :  { %v197_v9 = vpop.f32.mrf.mxu0 }
 0x111   :  { %v198_v10 = vadd.f32 %v2046_v8, %v197_v9 }
 0x112   :  { %v2181_v11 = vpop.f32.mrf.mxu0 }
 0x113   :  { %201 = vst [vmem:[#allocation3] sm:$0xff] %v198_v10 }
 0x114   :  { %v273_v12 = vpop.f32.mrf.mxu1 }
 0x116   :  { %v2192_v13 = vpop.f32.mrf.mxu1 }
 0x11a   :  { %v202_v14 = vld [vmem:[#allocation3] sm:$0x1]  ;;  %v308_v30 = vld [vmem:[#allocation3 + $0x1] sm:$0x1]  ;;  %v411_v48 = vld [vmem:[#allocation3 + $0x2] sm:$0x1] }
 0x11b   :  { %v277_v15 = vadd.f32 %v273_v12, %v202_v14  ;;  %v514_v3 = vld [vmem:[#allocation3 + $0x3] sm:$0x1] }
 0x11d   :  { %2393 = vtanh.f32 %v277_v15  ;;  %v2048_v17 = vmul.f32 -1.442695, %v277_v15 }
 0x11f   :  { %2395 = vpow2.f32 %v2048_v17 }
 0x12a   :  { %v2394_v16 = vpop.eup %2393 }
 0x12b   :  { %287 = vrot.lane.b32.xlu0 %v2394_v16, %s2681_s12 }
 0x12c   :  { %v2396_v18 = vpop.eup %2395 }
 0x12d   :  { %v281_v19 = vadd.f32 1.0, %v2396_v18 }
 0x12f   :  { %2397 = vrcp.f32 %v281_v19 }
 0x13c   :  { %v2398_v20 = vpop.eup %2397 }
 0x13d   :  { %v285_v23 = vmul.f32 0.0, %v2398_v20 }
 0x19d   :  { %v288_v21 = vpop.permute.xlu0 %287 }
 0x19e   :  { %v290_v22 = vmul.f32 %v2398_v20, %v288_v21 }
 0x1a0   :  { %292 = vrot.lane.b32.xlu0 %v290_v22, %s2681_s12 }
 0x212   :  { %v293_v24 = vpop.permute.xlu0 %292 }
 0x213   :  { %v295_v25 = vadd.f32 %v293_v24, %v285_v23 }
 0x215   :  { %2399 = vtanh.f32 %v295_v25 }
 0x222   :  { %v2400_v26 = vpop.eup %2399 }
 0x223   :  { %298 = vrot.lane.b32.xlu1 %v2400_v26, %s2681_s12 }
 0x295   :  { %v299_v27 = vpop.permute.xlu1 %298 }
 0x296   :  { %v301_v28 = vmul.f32 %v2398_v20, %v299_v27 }
 0x298   :  { %303 = vrot.lane.b32.xlu1 %v301_v28, %s2682_s3 }
 0x30a   :  { %v304_v29 = vpop.permute.xlu1 %303 }
 0x30b   :  { %307 = vst.msk [vmem:[#allocation2] sm:$0x1] %vm306_vm2, %v304_v29  ;;  %2202 = vmatmul.mubr.msk.f32.vlgmr.msra.gmra.mxu0 %vm203_vm3, %v304_v29 }
 0x30c   :  { %2216 = vmatpush3.msra.mxu0 %v2773_v4  ;;  %2223 = vmatprep.mubr.msk.f32.mxu0 %vm2680_vm0, %v2679_v0 }
 0x30d   :  { %2217 = vmatprep.subr.mxu0 %v2679_v0 }
 0x30e   :  { %2218 = vmatpush3.msra.mxu0 %v2775_v5 }
 0x30f   :  { %2219 = vmatprep.subr.mxu0 %v2679_v0 }
 0x310   :  { %2220 = vmatpush3.msra.mxu0 %v2780_v6 }
 0x311   :  { %2221 = vmatprep.subr.mxu0 %v2679_v0 }
 0x312   :  { %2222 = vmatpush3.msra.mxu0 %v2784_v7 }
 0x313   :  { %2237 = vmatprep.subr.mxu0 %v2679_v0 }
 0x3cb   :  { %v377_v31 = vpop.f32.mrf.mxu0 }
 0x3cc   :  { %v381_v32 = vadd.f32 %v377_v31, %v308_v30 }
 0x3cd   :  { %v2203_v33 = vpop.f32.mrf.mxu0 }
 0x3ce   :  { %2401 = vtanh.f32 %v381_v32  ;;  %v2050_v35 = vmul.f32 -1.442695, %v381_v32 }
 0x3d0   :  { %2403 = vpow2.f32 %v2050_v35 }
 0x3db   :  { %v2402_v34 = vpop.eup %2401 }
 0x3dc   :  { %391 = vrot.lane.b32.xlu0 %v2402_v34, %s2681_s12 }
 0x3dd   :  { %v2404_v36 = vpop.eup %2403 }
 0x3de   :  { %v385_v37 = vadd.f32 1.0, %v2404_v36 }
 0x3e0   :  { %2405 = vrcp.f32 %v385_v37 }
 0x3ed   :  { %v2406_v38 = vpop.eup %2405 }
 0x3ee   :  { %v389_v41 = vmul.f32 %v2406_v38, %v295_v25  ;;  %v617_v25 = vld [vmem:[#allocation3 + $0x4] sm:$0x1] }
 0x44e   :  { %v392_v39 = vpop.permute.xlu0 %391 }
 0x44f   :  { %v394_v40 = vmul.f32 %v2406_v38, %v392_v39 }
 0x451   :  { %396 = vrot.lane.b32.xlu1 %v394_v40, %s2681_s12 }
 0x4c3   :  { %v397_v42 = vpop.permute.xlu1 %396 }
 0x4c4   :  { %v399_v43 = vadd.f32 %v397_v42, %v389_v41 }
 0x4c6   :  { %2407 = vtanh.f32 %v399_v43 }
 0x4d3   :  { %v2408_v44 = vpop.eup %2407 }
 0x4d4   :  { %402 = vrot.lane.b32.xlu0 %v2408_v44, %s2681_s12 }
 0x546   :  { %v403_v45 = vpop.permute.xlu0 %402 }
 0x547   :  { %v405_v46 = vmul.f32 %v2406_v38, %v403_v45 }
 0x549   :  { %407 = vrot.lane.b32.xlu1 %v405_v46, %s2682_s3 }
 0x5bb   :  { %v408_v47 = vpop.permute.xlu1 %407 }
 0x5bc   :  { %410 = vst.msk [vmem:[#allocation2 + $0x1] sm:$0x1] %vm306_vm2, %v408_v47  ;;  %2213 = vmatmul.mubr.msk.f32.vlgmr.msra.gmra.mxu1 %vm203_vm3, %v408_v47 }
 0x5bd   :  { %2227 = vmatpush3.msra.mxu1 %v2773_v4  ;;  %2234 = vmatprep.mubr.msk.f32.mxu1 %vm2680_vm0, %v2679_v0 }
 0x5be   :  { %2228 = vmatprep.subr.mxu1 %v2679_v0 }
 0x5bf   :  { %2229 = vmatpush3.msra.mxu1 %v2775_v5 }
 0x5c0   :  { %2230 = vmatprep.subr.mxu1 %v2679_v0 }
 0x5c1   :  { %2231 = vmatpush3.msra.mxu1 %v2780_v6 }
 0x5c2   :  { %2232 = vmatprep.subr.mxu1 %v2679_v0 }
 0x5c3   :  { %2233 = vmatpush3.msra.mxu1 %v2784_v7 }
 0x5c4   :  { %2248 = vmatprep.subr.mxu1 %v2679_v0 }
 0x67c   :  { %v480_v49 = vpop.f32.mrf.mxu1 }
 0x67d   :  { %v484_v50 = vadd.f32 %v480_v49, %v411_v48 }
 0x67e   :  { %v2214_v51 = vpop.f32.mrf.mxu1 }
 0x67f   :  { %2409 = vtanh.f32 %v484_v50  ;;  %v2052_v53 = vmul.f32 -1.442695, %v484_v50 }
 0x681   :  { %2411 = vpow2.f32 %v2052_v53 }
 0x68c   :  { %v2410_v52 = vpop.eup %2409 }
 0x68d   :  { %494 = vrot.lane.b32.xlu0 %v2410_v52, %s2681_s12 }
 0x68e   :  { %v2412_v54 = vpop.eup %2411 }
 0x68f   :  { %v488_v55 = vadd.f32 1.0, %v2412_v54 }
 0x691   :  { %2413 = vrcp.f32 %v488_v55 }
 0x69e   :  { %v2414_v56 = vpop.eup %2413 }
 0x69f   :  { %v492_v59 = vmul.f32 %v2414_v56, %v399_v43  ;;  %v720_v43 = vld [vmem:[#allocation3 + $0x5] sm:$0x1] }
 0x6ff   :  { %v495_v57 = vpop.permute.xlu0 %494 }
 0x700   :  { %v497_v58 = vmul.f32 %v2414_v56, %v495_v57  ;;  %v823_v57 = vld [vmem:[#allocation3 + $0x6] sm:$0x1] }
 0x702   :  { %499 = vrot.lane.b32.xlu1 %v497_v58, %s2681_s12 }
 0x774   :  { %v500_v60 = vpop.permute.xlu1 %499 }
 0x775   :  { %v502_v61 = vadd.f32 %v500_v60, %v492_v59 }
 0x777   :  { %2415 = vtanh.f32 %v502_v61 }
 0x784   :  { %v2416_v62 = vpop.eup %2415 }
 0x785   :  { %505 = vrot.lane.b32.xlu0 %v2416_v62, %s2681_s12 }
 0x7f7   :  { %v506_v63 = vpop.permute.xlu0 %505 }
 0x7f8   :  { %v508_v1 = vmul.f32 %v2414_v56, %v506_v63 }
 0x7fa   :  { %510 = vrot.lane.b32.xlu1 %v508_v1, %s2682_s3 }
 0x86c   :  { %v511_v2 = vpop.permute.xlu1 %510 }
 0x86d   :  { %513 = vst.msk [vmem:[#allocation2 + $0x2] sm:$0x1] %vm306_vm2, %v511_v2  ;;  %2224 = vmatmul.mubr.msk.f32.vlgmr.msra.gmra.mxu0 %vm203_vm3, %v511_v2 }
 0x86e   :  { %2238 = vmatpush3.msra.mxu0 %v2773_v4  ;;  %2245 = vmatprep.mubr.msk.f32.mxu0 %vm2680_vm0, %v2679_v0 }
 0x86f   :  { %2239 = vmatprep.subr.mxu0 %v2679_v0 }
 0x870   :  { %2240 = vmatpush3.msra.mxu0 %v2775_v5 }
 0x871   :  { %2241 = vmatprep.subr.mxu0 %v2679_v0 }
 0x872   :  { %2242 = vmatpush3.msra.mxu0 %v2780_v6 }
 0x873   :  { %2243 = vmatprep.subr.mxu0 %v2679_v0 }
 0x874   :  { %2244 = vmatpush3.msra.mxu0 %v2784_v7 }
 0x875   :  { %2259 = vmatprep.subr.mxu0 %v2679_v0 }
 0x92d   :  { %v583_v8 = vpop.f32.mrf.mxu0 }
 0x92e   :  { %v587_v9 = vadd.f32 %v583_v8, %v514_v3 }
 0x92f   :  { %v2225_v10 = vpop.f32.mrf.mxu0 }
 0x930   :  { %2417 = vtanh.f32 %v587_v9  ;;  %v2054_v12 = vmul.f32 -1.442695, %v587_v9 }
 0x932   :  { %2419 = vpow2.f32 %v2054_v12 }
 0x93d   :  { %v2418_v11 = vpop.eup %2417 }
 0x93e   :  { %597 = vrot.lane.b32.xlu0 %v2418_v11, %s2681_s12 }
 0x93f   :  { %v2420_v13 = vpop.eup %2419 }
 0x940   :  { %v591_v14 = vadd.f32 1.0, %v2420_v13 }
 0x942   :  { %2421 = vrcp.f32 %v591_v14 }
 0x94f   :  { %v2422_v15 = vpop.eup %2421 }
 0x950   :  { %v595_v18 = vmul.f32 %v2422_v15, %v502_v61 }
 0x9b0   :  { %v598_v16 = vpop.permute.xlu0 %597 }
 0x9b1   :  { %v600_v17 = vmul.f32 %v2422_v15, %v598_v16  ;;  %v926_v16 = vld [vmem:[#allocation3 + $0x7] sm:$0x1] }
 0x9b3   :  { %602 = vrot.lane.b32.xlu1 %v600_v17, %s2681_s12 }
 0xa25   :  { %v603_v19 = vpop.permute.xlu1 %602 }
 0xa26   :  { %v605_v20 = vadd.f32 %v603_v19, %v595_v18 }
 0xa28   :  { %2423 = vtanh.f32 %v605_v20 }
 0xa35   :  { %v2424_v21 = vpop.eup %2423 }
 0xa36   :  { %608 = vrot.lane.b32.xlu0 %v2424_v21, %s2681_s12 }
 0xaa8   :  { %v609_v22 = vpop.permute.xlu0 %608 }
 0xaa9   :  { %v611_v23 = vmul.f32 %v2422_v15, %v609_v22 }
 0xaab   :  { %613 = vrot.lane.b32.xlu1 %v611_v23, %s2682_s3 }
 0xb1d   :  { %v614_v24 = vpop.permute.xlu1 %613 }
 0xb1e   :  { %616 = vst.msk [vmem:[#allocation2 + $0x3] sm:$0x1] %vm306_vm2, %v614_v24  ;;  %2235 = vmatmul.mubr.msk.f32.vlgmr.msra.gmra.mxu1 %vm203_vm3, %v614_v24 }
 0xb1f   :  { %2249 = vmatpush3.msra.mxu1 %v2773_v4  ;;  %2256 = vmatprep.mubr.msk.f32.mxu1 %vm2680_vm0, %v2679_v0 }
 0xb20   :  { %2250 = vmatprep.subr.mxu1 %v2679_v0 }
 0xb21   :  { %2251 = vmatpush3.msra.mxu1 %v2775_v5 }
 0xb22   :  { %2252 = vmatprep.subr.mxu1 %v2679_v0 }
 0xb23   :  { %2253 = vmatpush3.msra.mxu1 %v2780_v6 }
 0xb24   :  { %2254 = vmatprep.subr.mxu1 %v2679_v0 }
 0xb25   :  { %2255 = vmatpush3.msra.mxu1 %v2784_v7 }
 0xb26   :  { %2270 = vmatprep.subr.mxu1 %v2679_v0 }
 0xbde   :  { %v686_v26 = vpop.f32.mrf.mxu1 }
 0xbdf   :  { %v690_v27 = vadd.f32 %v686_v26, %v617_v25 }
 0xbe0   :  { %v2236_v28 = vpop.f32.mrf.mxu1 }
 0xbe1   :  { %2425 = vtanh.f32 %v690_v27  ;;  %v2056_v30 = vmul.f32 -1.442695, %v690_v27 }
 0xbe3   :  { %2427 = vpow2.f32 %v2056_v30 }
 0xbee   :  { %v2426_v29 = vpop.eup %2425 }
 0xbef   :  { %700 = vrot.lane.b32.xlu0 %v2426_v29, %s2681_s12 }
 0xbf0   :  { %v2428_v31 = vpop.eup %2427 }
 0xbf1   :  { %v694_v32 = vadd.f32 1.0, %v2428_v31  ;;  %v1032_v31 = vld [vmem:[#allocation10 + $0x18] sm:$0xff] }
 0xbf3   :  { %2429 = vrcp.f32 %v694_v32  ;;  %v1031_v32 = vld [vmem:[#allocation10 + $0x10] sm:$0xff] }
 0xc00   :  { %v2430_v33 = vpop.eup %2429 }
 0xc01   :  { %v698_v36 = vmul.f32 %v2430_v33, %v605_v20 }
 0xc61   :  { %v701_v34 = vpop.permute.xlu0 %700 }
 0xc62   :  { %v703_v35 = vmul.f32 %v2430_v33, %v701_v34  ;;  %v1029_v34 = vld [vmem:[#allocation10] sm:$0xff] }
 0xc64   :  { %705 = vrot.lane.b32.xlu1 %v703_v35, %s2681_s12  ;;  %v2917_v35 = vld [vmem:[#allocation12 + $0x18] sm:$0xff] }
 0xcd6   :  { %v706_v37 = vpop.permute.xlu1 %705 }
 0xcd7   :  { %v708_v38 = vadd.f32 %v706_v37, %v698_v36  ;;  %v2919_v36 = vld [vmem:[#allocation12 + $0x10] sm:$0xff] }
 0xcd9   :  { %2431 = vtanh.f32 %v708_v38 }
 0xce6   :  { %v2432_v39 = vpop.eup %2431 }
 0xce7   :  { %711 = vrot.lane.b32.xlu0 %v2432_v39, %s2681_s12 }
 0xd59   :  { %v712_v40 = vpop.permute.xlu0 %711 }
 0xd5a   :  { %v714_v41 = vmul.f32 %v2430_v33, %v712_v40  ;;  %v1030_v33 = vld [vmem:[#allocation10 + $0x8] sm:$0xff]  ;;  %v2928_v40 = vld [vmem:[#allocation12] sm:$0xff] }
 0xd5c   :  { %716 = vrot.lane.b32.xlu1 %v714_v41, %s2682_s3 }
 0xdce   :  { %v717_v42 = vpop.permute.xlu1 %716 }
 0xdcf   :  { %719 = vst.msk [vmem:[#allocation2 + $0x4] sm:$0x1] %vm306_vm2, %v717_v42  ;;  %2246 = vmatmul.mubr.msk.f32.vlgmr.msra.gmra.mxu0 %vm203_vm3, %v717_v42 }
 0xdd0   :  { %2260 = vmatpush3.msra.mxu0 %v2773_v4  ;;  %2267 = vmatprep.mubr.msk.f32.mxu0 %vm2680_vm0, %v2679_v0 }
 0xdd1   :  { %2261 = vmatprep.subr.mxu0 %v2679_v0 }
 0xdd2   :  { %2262 = vmatpush3.msra.mxu0 %v2775_v5 }
 0xdd3   :  { %2263 = vmatprep.subr.mxu0 %v2679_v0 }
 0xdd4   :  { %2264 = vmatpush3.msra.mxu0 %v2780_v6 }
 0xdd5   :  { %2265 = vmatprep.subr.mxu0 %v2679_v0 }
 0xdd6   :  { %2266 = vmatpush3.msra.mxu0 %v2784_v7 }
 0xdd7   :  { %2281 = vmatprep.subr.mxu0 %v2679_v0 }
 0xe8f   :  { %v789_v44 = vpop.f32.mrf.mxu0 }
 0xe90   :  { %v793_v4 = vadd.f32 %v789_v44, %v720_v43 }
 0xe91   :  { %v2247_v45 = vpop.f32.mrf.mxu0 }
 0xe92   :  { %2433 = vtanh.f32 %v793_v4  ;;  %v2058_v47 = vmul.f32 -1.442695, %v793_v4  ;;  %v2063_v4 = vld [vmem:[%s3075_s6] ss:$0 sm:$0xff] }
 0xe94   :  { %2435 = vpow2.f32 %v2058_v47 }
 0xe9f   :  { %v2434_v46 = vpop.eup %2433 }
 0xea0   :  { %803 = vrot.lane.b32.xlu0 %v2434_v46, %s2681_s12 }
 0xea1   :  { %v2436_v5 = vpop.eup %2435 }
 0xea2   :  { %v797_v48 = vadd.f32 1.0, %v2436_v5 }
 0xea4   :  { %2437 = vrcp.f32 %v797_v48 }
 0xeb1   :  { %v2438_v6 = vpop.eup %2437 }
 0xeb2   :  { %v801_v7 = vmul.f32 %v2438_v6, %v708_v38  ;;  %v2924_v38 = vld [vmem:[#allocation12 + $0x8] sm:$0xff] }
 0xf12   :  { %v804_v49 = vpop.permute.xlu0 %803 }
 0xf13   :  { %v806_v50 = vmul.f32 %v2438_v6, %v804_v49 }
 0xf15   :  { %808 = vrot.lane.b32.xlu1 %v806_v50, %s2681_s12 }
 0xf87   :  { %v809_v51 = vpop.permute.xlu1 %808 }
 0xf88   :  { %v811_v52 = vadd.f32 %v809_v51, %v801_v7 }
 0xf8a   :  { %2439 = vtanh.f32 %v811_v52 }
 0xf97   :  { %v2440_v53 = vpop.eup %2439 }
 0xf98   :  { %814 = vrot.lane.b32.xlu0 %v2440_v53, %s2681_s12 }
0x100a   :  { %v815_v54 = vpop.permute.xlu0 %814 }
0x100b   :  { %v817_v55 = vmul.f32 %v2438_v6, %v815_v54 }
0x100d   :  { %819 = vrot.lane.b32.xlu1 %v817_v55, %s2682_s3 }
0x107f   :  { %v820_v56 = vpop.permute.xlu1 %819 }
0x1080   :  { %822 = vst.msk [vmem:[#allocation2 + $0x5] sm:$0x1] %vm306_vm2, %v820_v56  ;;  %2257 = vmatmul.mubr.msk.f32.vlgmr.msra.gmra.mxu1 %vm203_vm3, %v820_v56 }
0x1081   :  { %2278 = vmatprep.mubr.msk.f32.mxu1 %vm2680_vm0, %v2679_v0  ;;  %2271 = vmatpush3.msra.mxu1 %v1032_v31 }
0x1082   :  { %2272 = vmatprep.subr.mxu1 %v2679_v0 }
0x1083   :  { %2273 = vmatpush3.msra.mxu1 %v1031_v32 }
0x1084   :  { %2274 = vmatprep.subr.mxu1 %v2679_v0 }
0x1085   :  { %2275 = vmatpush3.msra.mxu1 %v1030_v33 }
0x1086   :  { %2276 = vmatprep.subr.mxu1 %v2679_v0 }
0x1087   :  { %2277 = vmatpush3.msra.mxu1 %v1029_v34 }
0x1088   :  { %2292 = vmatprep.subr.mxu1 %v2679_v0 }
0x1140   :  { %v892_v58 = vpop.f32.mrf.mxu1 }
0x1141   :  { %v896_v59 = vadd.f32 %v892_v58, %v823_v57 }
0x1142   :  { %v2258_v60 = vpop.f32.mrf.mxu1 }
0x1143   :  { %2441 = vtanh.f32 %v896_v59  ;;  %v2060_v62 = vmul.f32 -1.442695, %v896_v59 }
0x1145   :  { %2443 = vpow2.f32 %v2060_v62 }
0x1150   :  { %v2442_v61 = vpop.eup %2441 }
0x1151   :  { %906 = vrot.lane.b32.xlu0 %v2442_v61, %s2681_s12 }
0x1152   :  { %v2444_v63 = vpop.eup %2443 }
0x1153   :  { %v900_v1 = vadd.f32 1.0, %v2444_v63 }
0x1155   :  { %2445 = vrcp.f32 %v900_v1 }
0x1162   :  { %v2446_v2 = vpop.eup %2445 }
0x1163   :  { %v904_v9 = vmul.f32 %v2446_v2, %v811_v52 }
0x11c3   :  { %v907_v3 = vpop.permute.xlu0 %906 }
0x11c4   :  { %v909_v8 = vmul.f32 %v2446_v2, %v907_v3 }
0x11c6   :  { %911 = vrot.lane.b32.xlu1 %v909_v8, %s2681_s12 }
0x1238   :  { %v912_v10 = vpop.permute.xlu1 %911 }
0x1239   :  { %v914_v11 = vadd.f32 %v912_v10, %v904_v9 }
0x123b   :  { %2447 = vtanh.f32 %v914_v11 }
0x1248   :  { %v2448_v12 = vpop.eup %2447 }
0x1249   :  { %917 = vrot.lane.b32.xlu0 %v2448_v12, %s2681_s12 }
0x12bb   :  { %v918_v13 = vpop.permute.xlu0 %917 }
0x12bc   :  { %v920_v14 = vmul.f32 %v2446_v2, %v918_v13 }
0x12be   :  { %922 = vrot.lane.b32.xlu1 %v920_v14, %s2682_s3 }
0x1330   :  { %v923_v15 = vpop.permute.xlu1 %922 }
0x1331   :  { %925 = vst.msk [vmem:[#allocation2 + $0x6] sm:$0x1] %vm306_vm2, %v923_v15  ;;  %2268 = vmatmul.mubr.msk.f32.vlgmr.msra.gmra.mxu0 %vm203_vm3, %v923_v15 }
0x1332   :  { %2289 = vmatprep.mubr.msk.f32.mxu0 %vm2680_vm0, %v2679_v0  ;;  %2282 = vmatpush3.msra.mxu0 %v2917_v35 }
0x1333   :  { %2283 = vmatprep.subr.mxu0 %v2679_v0 }
0x1334   :  { %2284 = vmatpush3.msra.mxu0 %v2919_v36 }
0x1335   :  { %2285 = vmatprep.subr.mxu0 %v2679_v0 }
0x1336   :  { %2286 = vmatpush3.msra.mxu0 %v2924_v38 }
0x1337   :  { %2287 = vmatprep.subr.mxu0 %v2679_v0 }
0x1338   :  { %2288 = vmatpush3.msra.mxu0 %v2928_v40 }
0x1339   :  { %2290 = vmatmul.mubr.f32.vlgmr.msra.gmra.mxu0 %v2679_v0  ;;  %2303 = vmatprep.subr.mxu0 %v2679_v0 }
0x133a   :  { %2304 = vmatpush3.msra.mxu0 %v2917_v35  ;;  %2311 = vmatprep.mubr.msk.f32.mxu0 %vm2680_vm0, %v2679_v0 }
0x133b   :  { %2305 = vmatprep.subr.mxu0 %v2679_v0 }
0x133c   :  { %2306 = vmatpush3.msra.mxu0 %v2919_v36 }
0x133d   :  { %2307 = vmatprep.subr.mxu0 %v2679_v0 }
0x133e   :  { %2308 = vmatpush3.msra.mxu0 %v2924_v38 }
0x133f   :  { %2309 = vmatprep.subr.mxu0 %v2679_v0 }
0x1340   :  { %2310 = vmatpush3.msra.mxu0 %v2928_v40 }
0x1341   :  { %2325 = vmatprep.subr.mxu0 %v2679_v0 }
0x13f1   :  { %v995_v17 = vpop.f32.mrf.mxu0 }
0x13f2   :  { %v999_v18 = vadd.f32 %v995_v17, %v926_v16 }
0x13f3   :  { %v2269_v19 = vpop.f32.mrf.mxu0 }
0x13f4   :  { %2449 = vtanh.f32 %v999_v18  ;;  %v2062_v21 = vmul.f32 -1.442695, %v999_v18 }
0x13f6   :  { %2451 = vpow2.f32 %v2062_v21 }
0x13f9   :  { %v1186_v43 = vpop.f32.mrf.mxu0 }
0x13fb   :  { %v2291_v44 = vpop.f32.mrf.mxu0 }
0x1401   :  { %v2450_v20 = vpop.eup %2449 }
0x1402   :  { %1009 = vrot.lane.b32.xlu0 %v2450_v20, %s2681_s12 }
0x1403   :  { %v2452_v22 = vpop.eup %2451 }
0x1404   :  { %v1003_v23 = vadd.f32 1.0, %v2452_v22 }
0x1406   :  { %2453 = vrcp.f32 %v1003_v23 }
0x1413   :  { %v2454_v24 = vpop.eup %2453 }
0x1414   :  { %v1007_v27 = vmul.f32 %v2454_v24, %v914_v11 }
0x1474   :  { %v1010_v25 = vpop.permute.xlu0 %1009 }
0x1475   :  { %v1012_v26 = vmul.f32 %v2454_v24, %v1010_v25 }
0x1477   :  { %1014 = vrot.lane.b32.xlu1 %v1012_v26, %s2681_s12 }
0x14e9   :  { %v1015_v28 = vpop.permute.xlu1 %1014 }
0x14ea   :  { %v1017_v29 = vadd.f32 %v1015_v28, %v1007_v27 }
0x14ec   :  { %2455 = vtanh.f32 %v1017_v29 }
0x14f9   :  { %v2456_v30 = vpop.eup %2455 }
0x14fa   :  { %1020 = vrot.lane.b32.xlu0 %v2456_v30, %s2681_s12 }
0x156c   :  { %v1021_v37 = vpop.permute.xlu0 %1020 }
0x156d   :  { %v1023_v39 = vmul.f32 %v2454_v24, %v1021_v37 }
0x156f   :  { %1025 = vrot.lane.b32.xlu1 %v1023_v39, %s2682_s3 }
0x15e1   :  { %v1026_v41 = vpop.permute.xlu1 %1025 }
0x15e2   :  { %1028 = vst.msk [vmem:[#allocation2 + $0x7] sm:$0x1] %vm306_vm2, %v1026_v41 }
0x15e9   :  { %v1038_v42 = vld [vmem:[#allocation2] sm:$0xff] }
0x15ea   :  { %2279 = vmatmul.mubr.msk.f32.vlgmr.msra.gmra.mxu1 %vm203_vm3, %v1038_v42 }
0x15eb   :  { %2293 = vmatpush3.msra.mxu1 %v2917_v35  ;;  %2300 = vmatprep.mubr.msk.f32.mxu1 %vm2680_vm0, %v2679_v0 }
0x15ec   :  { %2294 = vmatprep.subr.mxu1 %v2679_v0 }
0x15ed   :  { %2295 = vmatpush3.msra.mxu1 %v2919_v36 }
0x15ee   :  { %2296 = vmatprep.subr.mxu1 %v2679_v0 }
0x15ef   :  { %2297 = vmatpush3.msra.mxu1 %v2924_v38 }
0x15f0   :  { %2298 = vmatprep.subr.mxu1 %v2679_v0 }
0x15f1   :  { %2299 = vmatpush3.msra.mxu1 %v2928_v40 }
0x15f2   :  { %2314 = vmatprep.subr.mxu1 %v2679_v0 }
0x16aa   :  { %v1114_v45 = vpop.f32.mrf.mxu1 }
0x16ab   :  { %v1115_v46 = vadd.f32 %v2063_v4, %v1114_v45 }
0x16ac   :  { %v2280_v47 = vpop.f32.mrf.mxu1 }
0x16ad   :  { %1118 = vst [vmem:[#allocation3] sm:$0xff] %v1115_v46 }
0x16b4   :  { %v1119_v5 = vld [vmem:[#allocation3] sm:$0x1]  ;;  %v1220_v61 = vld [vmem:[#allocation3 + $0x1] sm:$0x1]  ;;  %v1323_v20 = vld [vmem:[#allocation3 + $0x2] sm:$0x1] }
0x16b5   :  { %v1190_v48 = vadd.f32 %v1186_v43, %v1119_v5  ;;  %v1426_v42 = vld [vmem:[#allocation3 + $0x3] sm:$0x1] }
0x16b7   :  { %2457 = vtanh.f32 %v1190_v48  ;;  %v2065_v49 = vmul.f32 -1.442695, %v1190_v48 }
0x16b9   :  { %2459 = vpow2.f32 %v2065_v49 }
0x16c4   :  { %v2458_v6 = vpop.eup %2457 }
0x16c5   :  { %1200 = vrot.lane.b32.xlu0 %v2458_v6, %s2681_s12 }
0x16c6   :  { %v2460_v50 = vpop.eup %2459 }
0x16c7   :  { %v1194_v7 = vadd.f32 1.0, %v2460_v50 }
0x16c9   :  { %2461 = vrcp.f32 %v1194_v7 }
0x16d6   :  { %v2462_v51 = vpop.eup %2461 }
0x16d7   :  { %v1198_v54 = vmul.f32 0.0, %v2462_v51 }
0x1737   :  { %v1201_v52 = vpop.permute.xlu0 %1200 }
0x1738   :  { %v1203_v53 = vmul.f32 %v2462_v51, %v1201_v52 }
0x173a   :  { %1205 = vrot.lane.b32.xlu1 %v1203_v53, %s2681_s12 }
0x17ac   :  { %v1206_v55 = vpop.permute.xlu1 %1205 }
0x17ad   :  { %v1208_v56 = vadd.f32 %v1206_v55, %v1198_v54 }
0x17af   :  { %2463 = vtanh.f32 %v1208_v56 }
0x17bc   :  { %v2464_v57 = vpop.eup %2463 }
0x17bd   :  { %1211 = vrot.lane.b32.xlu0 %v2464_v57, %s2681_s12 }
0x182f   :  { %v1212_v58 = vpop.permute.xlu0 %1211 }
0x1830   :  { %v1214_v59 = vmul.f32 %v2462_v51, %v1212_v58 }
0x1832   :  { %1216 = vrot.lane.b32.xlu1 %v1214_v59, %s2682_s3 }
0x18a4   :  { %v1217_v60 = vpop.permute.xlu1 %1216 }
0x18a5   :  { %1219 = vst.msk [vmem:[#allocation2] sm:$0x1] %vm306_vm2, %v1217_v60  ;;  %2301 = vmatmul.mubr.msk.f32.vlgmr.msra.gmra.mxu1 %vm203_vm3, %v1217_v60 }
0x18a6   :  { %2315 = vmatpush3.msra.mxu1 %v2917_v35  ;;  %2322 = vmatprep.mubr.msk.f32.mxu1 %vm2680_vm0, %v2679_v0 }
0x18a7   :  { %2316 = vmatprep.subr.mxu1 %v2679_v0 }
0x18a8   :  { %2317 = vmatpush3.msra.mxu1 %v2919_v36 }
0x18a9   :  { %2318 = vmatprep.subr.mxu1 %v2679_v0 }
0x18aa   :  { %2319 = vmatpush3.msra.mxu1 %v2924_v38 }
0x18ab   :  { %2320 = vmatprep.subr.mxu1 %v2679_v0 }
0x18ac   :  { %2321 = vmatpush3.msra.mxu1 %v2928_v40 }
0x18ad   :  { %2336 = vmatprep.subr.mxu1 %v2679_v0 }
0x1965   :  { %v1289_v62 = vpop.f32.mrf.mxu1 }
0x1966   :  { %v1293_v63 = vadd.f32 %v1289_v62, %v1220_v61 }
0x1967   :  { %v2302_v1 = vpop.f32.mrf.mxu1 }
0x1968   :  { %2465 = vtanh.f32 %v1293_v63  ;;  %v2067_v3 = vmul.f32 -1.442695, %v1293_v63 }
0x196a   :  { %2467 = vpow2.f32 %v2067_v3 }
0x1975   :  { %v2466_v2 = vpop.eup %2465 }
0x1976   :  { %1303 = vrot.lane.b32.xlu0 %v2466_v2, %s2681_s12 }
0x1977   :  { %v2468_v8 = vpop.eup %2467 }
0x1978   :  { %v1297_v9 = vadd.f32 1.0, %v2468_v8 }
0x197a   :  { %2469 = vrcp.f32 %v1297_v9 }
0x1987   :  { %v2470_v10 = vpop.eup %2469 }
0x1988   :  { %v1301_v13 = vmul.f32 %v2470_v10, %v1208_v56  ;;  %v1529_v56 = vld [vmem:[#allocation3 + $0x4] sm:$0x1] }
0x19e8   :  { %v1304_v11 = vpop.permute.xlu0 %1303 }
0x19e9   :  { %v1306_v12 = vmul.f32 %v2470_v10, %v1304_v11 }
0x19eb   :  { %1308 = vrot.lane.b32.xlu1 %v1306_v12, %s2681_s12 }
0x1a5d   :  { %v1309_v14 = vpop.permute.xlu1 %1308 }
0x1a5e   :  { %v1311_v15 = vadd.f32 %v1309_v14, %v1301_v13 }
0x1a60   :  { %2471 = vtanh.f32 %v1311_v15 }
0x1a6d   :  { %v2472_v16 = vpop.eup %2471 }
0x1a6e   :  { %1314 = vrot.lane.b32.xlu0 %v2472_v16, %s2681_s12 }
0x1ae0   :  { %v1315_v17 = vpop.permute.xlu0 %1314 }
0x1ae1   :  { %v1317_v18 = vmul.f32 %v2470_v10, %v1315_v17 }
0x1ae3   :  { %1319 = vrot.lane.b32.xlu1 %v1317_v18, %s2682_s3 }
0x1b55   :  { %v1320_v19 = vpop.permute.xlu1 %1319 }
0x1b56   :  { %1322 = vst.msk [vmem:[#allocation2 + $0x1] sm:$0x1] %vm306_vm2, %v1320_v19  ;;  %2312 = vmatmul.mubr.msk.f32.vlgmr.msra.gmra.mxu0 %vm203_vm3, %v1320_v19 }
0x1b57   :  { %2326 = vmatpush3.msra.mxu0 %v2917_v35  ;;  %2333 = vmatprep.mubr.msk.f32.mxu0 %vm2680_vm0, %v2679_v0 }
0x1b58   :  { %2327 = vmatprep.subr.mxu0 %v2679_v0 }
0x1b59   :  { %2328 = vmatpush3.msra.mxu0 %v2919_v36 }
0x1b5a   :  { %2329 = vmatprep.subr.mxu0 %v2679_v0 }
0x1b5b   :  { %2330 = vmatpush3.msra.mxu0 %v2924_v38 }
0x1b5c   :  { %2331 = vmatprep.subr.mxu0 %v2679_v0 }
0x1b5d   :  { %2332 = vmatpush3.msra.mxu0 %v2928_v40 }
0x1b5e   :  { %2347 = vmatprep.subr.mxu0 %v2679_v0 }
0x1c16   :  { %v1392_v21 = vpop.f32.mrf.mxu0 }
0x1c17   :  { %v1396_v22 = vadd.f32 %v1392_v21, %v1323_v20 }
0x1c18   :  { %v2313_v23 = vpop.f32.mrf.mxu0 }
0x1c19   :  { %2473 = vtanh.f32 %v1396_v22  ;;  %v2069_v25 = vmul.f32 -1.442695, %v1396_v22 }
0x1c1b   :  { %2475 = vpow2.f32 %v2069_v25 }
0x1c26   :  { %v2474_v24 = vpop.eup %2473 }
0x1c27   :  { %1406 = vrot.lane.b32.xlu0 %v2474_v24, %s2681_s12 }
0x1c28   :  { %v2476_v26 = vpop.eup %2475 }
0x1c29   :  { %v1400_v27 = vadd.f32 1.0, %v2476_v26 }
0x1c2b   :  { %2477 = vrcp.f32 %v1400_v27 }
0x1c38   :  { %v2478_v28 = vpop.eup %2477 }
0x1c39   :  { %v1404_v31 = vmul.f32 %v2478_v28, %v1311_v15  ;;  %v1632_v15 = vld [vmem:[#allocation3 + $0x5] sm:$0x1] }
0x1c99   :  { %v1407_v29 = vpop.permute.xlu0 %1406 }
0x1c9a   :  { %v1409_v30 = vmul.f32 %v2478_v28, %v1407_v29  ;;  %v1735_v29 = vld [vmem:[#allocation3 + $0x6] sm:$0x1] }
0x1c9c   :  { %1411 = vrot.lane.b32.xlu1 %v1409_v30, %s2681_s12 }
0x1d0e   :  { %v1412_v32 = vpop.permute.xlu1 %1411 }
0x1d0f   :  { %v1414_v33 = vadd.f32 %v1412_v32, %v1404_v31 }
0x1d11   :  { %2479 = vtanh.f32 %v1414_v33 }
0x1d1e   :  { %v2480_v34 = vpop.eup %2479 }
0x1d1f   :  { %1417 = vrot.lane.b32.xlu0 %v2480_v34, %s2681_s12 }
0x1d91   :  { %v1418_v37 = vpop.permute.xlu0 %1417 }
0x1d92   :  { %v1420_v39 = vmul.f32 %v2478_v28, %v1418_v37 }
0x1d94   :  { %1422 = vrot.lane.b32.xlu1 %v1420_v39, %s2682_s3 }
0x1e06   :  { %v1423_v41 = vpop.permute.xlu1 %1422 }
0x1e07   :  { %1425 = vst.msk [vmem:[#allocation2 + $0x2] sm:$0x1] %vm306_vm2, %v1423_v41  ;;  %2323 = vmatmul.mubr.msk.f32.vlgmr.msra.gmra.mxu1 %vm203_vm3, %v1423_v41 }
0x1e08   :  { %2337 = vmatpush3.msra.mxu1 %v2917_v35  ;;  %2344 = vmatprep.mubr.msk.f32.mxu1 %vm2680_vm0, %v2679_v0 }
0x1e09   :  { %2338 = vmatprep.subr.mxu1 %v2679_v0 }
0x1e0a   :  { %2339 = vmatpush3.msra.mxu1 %v2919_v36 }
0x1e0b   :  { %2340 = vmatprep.subr.mxu1 %v2679_v0 }
0x1e0c   :  { %2341 = vmatpush3.msra.mxu1 %v2924_v38 }
0x1e0d   :  { %2342 = vmatprep.subr.mxu1 %v2679_v0 }
0x1e0e   :  { %2343 = vmatpush3.msra.mxu1 %v2928_v40 }
0x1e0f   :  { %2358 = vmatprep.subr.mxu1 %v2679_v0 }
0x1ec7   :  { %v1495_v43 = vpop.f32.mrf.mxu1 }
0x1ec8   :  { %v1499_v44 = vadd.f32 %v1495_v43, %v1426_v42 }
0x1ec9   :  { %v2324_v4 = vpop.f32.mrf.mxu1 }
0x1eca   :  { %2481 = vtanh.f32 %v1499_v44  ;;  %v2071_v46 = vmul.f32 -1.442695, %v1499_v44 }
0x1ecc   :  { %2483 = vpow2.f32 %v2071_v46 }
0x1ed7   :  { %v2482_v45 = vpop.eup %2481 }
0x1ed8   :  { %1509 = vrot.lane.b32.xlu0 %v2482_v45, %s2681_s12 }
0x1ed9   :  { %v2484_v47 = vpop.eup %2483 }
0x1eda   :  { %v1503_v5 = vadd.f32 1.0, %v2484_v47 }
0x1edc   :  { %2485 = vrcp.f32 %v1503_v5 }
0x1ee9   :  { %v2486_v48 = vpop.eup %2485 }
0x1eea   :  { %v1507_v50 = vmul.f32 %v2486_v48, %v1414_v33 }
0x1f4a   :  { %v1510_v6 = vpop.permute.xlu0 %1509 }
0x1f4b   :  { %v1512_v49 = vmul.f32 %v2486_v48, %v1510_v6  ;;  %v1838_v6 = vld [vmem:[#allocation3 + $0x7] sm:$0x1] }
0x1f4d   :  { %1514 = vrot.lane.b32.xlu1 %v1512_v49, %s2681_s12 }
0x1fbf   :  { %v1515_v7 = vpop.permute.xlu1 %1514 }
0x1fc0   :  { %v1517_v51 = vadd.f32 %v1515_v7, %v1507_v50 }
0x1fc2   :  { %2487 = vtanh.f32 %v1517_v51 }
0x1fcf   :  { %v2488_v52 = vpop.eup %2487 }
0x1fd0   :  { %1520 = vrot.lane.b32.xlu0 %v2488_v52, %s2681_s12 }
0x2042   :  { %v1521_v53 = vpop.permute.xlu0 %1520 }
0x2043   :  { %v1523_v54 = vmul.f32 %v2486_v48, %v1521_v53 }
0x2045   :  { %1525 = vrot.lane.b32.xlu1 %v1523_v54, %s2682_s3 }
0x20b7   :  { %v1526_v55 = vpop.permute.xlu1 %1525 }
0x20b8   :  { %1528 = vst.msk [vmem:[#allocation2 + $0x3] sm:$0x1] %vm306_vm2, %v1526_v55  ;;  %2334 = vmatmul.mubr.msk.f32.vlgmr.msra.gmra.mxu0 %vm203_vm3, %v1526_v55 }
0x20b9   :  { %2348 = vmatpush3.msra.mxu0 %v2917_v35  ;;  %2355 = vmatprep.mubr.msk.f32.mxu0 %vm2680_vm0, %v2679_v0 }
0x20ba   :  { %2349 = vmatprep.subr.mxu0 %v2679_v0 }
0x20bb   :  { %2350 = vmatpush3.msra.mxu0 %v2919_v36 }
0x20bc   :  { %2351 = vmatprep.subr.mxu0 %v2679_v0 }
0x20bd   :  { %2352 = vmatpush3.msra.mxu0 %v2924_v38 }
0x20be   :  { %2353 = vmatprep.subr.mxu0 %v2679_v0 }
0x20bf   :  { %2354 = vmatpush3.msra.mxu0 %v2928_v40 }
0x20c0   :  { %2369 = vmatprep.subr.mxu0 %v2679_v0 }
0x2178   :  { %v1598_v57 = vpop.f32.mrf.mxu0 }
0x2179   :  { %v1602_v58 = vadd.f32 %v1598_v57, %v1529_v56 }
0x217a   :  { %v2335_v59 = vpop.f32.mrf.mxu0 }
0x217b   :  { %2489 = vtanh.f32 %v1602_v58  ;;  %v2073_v61 = vmul.f32 -1.442695, %v1602_v58 }
0x217d   :  { %2491 = vpow2.f32 %v2073_v61 }
0x2188   :  { %v2490_v60 = vpop.eup %2489 }
0x2189   :  { %1612 = vrot.lane.b32.xlu0 %v2490_v60, %s2681_s12 }
0x218a   :  { %v2492_v62 = vpop.eup %2491 }
0x218b   :  { %v1606_v63 = vadd.f32 1.0, %v2492_v62  ;;  %v1946_v62 = vld [vmem:[#allocation13 + $0x18] sm:$0xff] }
0x218d   :  { %2493 = vrcp.f32 %v1606_v63  ;;  %v1945_v63 = vld [vmem:[#allocation13 + $0x10] sm:$0xff] }
0x219a   :  { %v2494_v1 = vpop.eup %2493 }
0x219b   :  { %v1610_v8 = vmul.f32 %v2494_v1, %v1517_v51 }
0x21fb   :  { %v1613_v2 = vpop.permute.xlu0 %1612 }
0x21fc   :  { %v1615_v3 = vmul.f32 %v2494_v1, %v1613_v2  ;;  %v1943_v2 = vld [vmem:[#allocation13] sm:$0xff] }
0x21fe   :  { %1617 = vrot.lane.b32.xlu1 %v1615_v3, %s2681_s12 }
0x2270   :  { %v1618_v9 = vpop.permute.xlu1 %1617 }
0x2271   :  { %v1620_v10 = vadd.f32 %v1618_v9, %v1610_v8 }
0x2273   :  { %2495 = vtanh.f32 %v1620_v10 }
0x2280   :  { %v2496_v11 = vpop.eup %2495 }
0x2281   :  { %1623 = vrot.lane.b32.xlu0 %v2496_v11, %s2681_s12 }
0x22f3   :  { %v1624_v12 = vpop.permute.xlu0 %1623 }
0x22f4   :  { %v1626_v13 = vmul.f32 %v2494_v1, %v1624_v12  ;;  %v1944_v1 = vld [vmem:[#allocation13 + $0x8] sm:$0xff]  ;;  %v2080_v12 = vld [vmem:[%s3077_s8] ss:$0 sm:$0xff] }
0x22f6   :  { %1628 = vrot.lane.b32.xlu1 %v1626_v13, %s2682_s3 }
0x2368   :  { %v1629_v14 = vpop.permute.xlu1 %1628 }
0x2369   :  { %1631 = vst.msk [vmem:[#allocation2 + $0x4] sm:$0x1] %vm306_vm2, %v1629_v14  ;;  %2345 = vmatmul.mubr.msk.f32.vlgmr.msra.gmra.mxu1 %vm203_vm3, %v1629_v14 }
0x236a   :  { %2359 = vmatpush3.msra.mxu1 %v2917_v35  ;;  %2366 = vmatprep.mubr.msk.f32.mxu1 %vm2680_vm0, %v2679_v0 }
0x236b   :  { %2360 = vmatprep.subr.mxu1 %v2679_v0 }
0x236c   :  { %2361 = vmatpush3.msra.mxu1 %v2919_v36 }
0x236d   :  { %2362 = vmatprep.subr.mxu1 %v2679_v0 }
0x236e   :  { %2363 = vmatpush3.msra.mxu1 %v2924_v38 }
0x236f   :  { %2364 = vmatprep.subr.mxu1 %v2679_v0 }
0x2370   :  { %2365 = vmatpush3.msra.mxu1 %v2928_v40 }
0x2429   :  { %v1701_v16 = vpop.f32.mrf.mxu1 }
0x242a   :  { %v1705_v17 = vadd.f32 %v1701_v16, %v1632_v15 }
0x242b   :  { %v2346_v18 = vpop.f32.mrf.mxu1 }
0x242c   :  { %2497 = vtanh.f32 %v1705_v17  ;;  %v2075_v19 = vmul.f32 -1.442695, %v1705_v17 }
0x242e   :  { %2499 = vpow2.f32 %v2075_v19 }
0x2439   :  { %v2498_v35 = vpop.eup %2497 }
0x243a   :  { %1715 = vrot.lane.b32.xlu0 %v2498_v35, %s2681_s12 }
0x243b   :  { %v2500_v20 = vpop.eup %2499 }
0x243c   :  { %v1709_v36 = vadd.f32 1.0, %v2500_v20 }
0x243e   :  { %2501 = vrcp.f32 %v1709_v36 }
0x244b   :  { %v2502_v21 = vpop.eup %2501 }
0x244c   :  { %v1713_v23 = vmul.f32 %v2502_v21, %v1620_v10 }
0x24ac   :  { %v1716_v22 = vpop.permute.xlu0 %1715 }
0x24ad   :  { %v1718_v38 = vmul.f32 %v2502_v21, %v1716_v22 }
0x24af   :  { %1720 = vrot.lane.b32.xlu1 %v1718_v38, %s2681_s12 }
0x2521   :  { %v1721_v40 = vpop.permute.xlu1 %1720 }
0x2522   :  { %v1723_v24 = vadd.f32 %v1721_v40, %v1713_v23 }
0x2524   :  { %2503 = vtanh.f32 %v1723_v24 }
0x2531   :  { %v2504_v25 = vpop.eup %2503 }
0x2532   :  { %1726 = vrot.lane.b32.xlu0 %v2504_v25, %s2681_s12 }
0x25a4   :  { %v1727_v26 = vpop.permute.xlu0 %1726 }
0x25a5   :  { %v1729_v27 = vmul.f32 %v2502_v21, %v1727_v26 }
0x25a7   :  { %1731 = vrot.lane.b32.xlu1 %v1729_v27, %s2682_s3 }
0x2619   :  { %v1732_v28 = vpop.permute.xlu1 %1731 }
0x261a   :  { %1734 = vst.msk [vmem:[#allocation2 + $0x5] sm:$0x1] %vm306_vm2, %v1732_v28  ;;  %2356 = vmatmul.mubr.msk.f32.vlgmr.msra.gmra.mxu0 %vm203_vm3, %v1732_v28 }
0x261b   :  { %2377 = vmatprep.mubr.msk.f32.mxu0 %vm2680_vm0, %v2679_v0  ;;  %2370 = vmatpush3.msra.mxu0 %v1946_v62 }
0x261c   :  { %2371 = vmatprep.subr.mxu0 %v2679_v0 }
0x261d   :  { %2372 = vmatpush3.msra.mxu0 %v1945_v63 }
0x261e   :  { %2373 = vmatprep.subr.mxu0 %v2679_v0 }
0x261f   :  { %2374 = vmatpush3.msra.mxu0 %v1944_v1 }
0x2620   :  { %2375 = vmatprep.subr.mxu0 %v2679_v0 }
0x2621   :  { %2376 = vmatpush3.msra.mxu0 %v1943_v2 }
0x26da   :  { %v1804_v30 = vpop.f32.mrf.mxu0 }
0x26db   :  { %v1808_v31 = vadd.f32 %v1804_v30, %v1735_v29 }
0x26dc   :  { %v2357_v32 = vpop.f32.mrf.mxu0 }
0x26dd   :  { %2505 = vtanh.f32 %v1808_v31  ;;  %v2077_v34 = vmul.f32 -1.442695, %v1808_v31 }
0x26df   :  { %2507 = vpow2.f32 %v2077_v34 }
0x26ea   :  { %v2506_v33 = vpop.eup %2505 }
0x26eb   :  { %1818 = vrot.lane.b32.xlu0 %v2506_v33, %s2681_s12 }
0x26ec   :  { %v2508_v37 = vpop.eup %2507 }
0x26ed   :  { %v1812_v39 = vadd.f32 1.0, %v2508_v37 }
0x26ef   :  { %2509 = vrcp.f32 %v1812_v39 }
0x26fc   :  { %v2510_v41 = vpop.eup %2509 }
0x26fd   :  { %v1816_v44 = vmul.f32 %v2510_v41, %v1723_v24 }
0x275d   :  { %v1819_v42 = vpop.permute.xlu0 %1818 }
0x275e   :  { %v1821_v43 = vmul.f32 %v2510_v41, %v1819_v42 }
0x2760   :  { %1823 = vrot.lane.b32.xlu1 %v1821_v43, %s2681_s12 }
0x27d2   :  { %v1824_v4 = vpop.permute.xlu1 %1823 }
0x27d3   :  { %v1826_v45 = vadd.f32 %v1824_v4, %v1816_v44 }
0x27d5   :  { %2511 = vtanh.f32 %v1826_v45 }
0x27e2   :  { %v2512_v46 = vpop.eup %2511 }
0x27e3   :  { %1829 = vrot.lane.b32.xlu0 %v2512_v46, %s2681_s12 }
0x2855   :  { %v1830_v47 = vpop.permute.xlu0 %1829 }
0x2856   :  { %v1832_v5 = vmul.f32 %v2510_v41, %v1830_v47 }
0x2858   :  { %1834 = vrot.lane.b32.xlu1 %v1832_v5, %s2682_s3 }
0x28ca   :  { %v1835_v48 = vpop.permute.xlu1 %1834 }
0x28cb   :  { %1837 = vst.msk [vmem:[#allocation2 + $0x6] sm:$0x1] %vm306_vm2, %v1835_v48  ;;  %2367 = vmatmul.mubr.msk.f32.vlgmr.msra.gmra.mxu1 %vm203_vm3, %v1835_v48 }
0x298b   :  { %v1907_v49 = vpop.f32.mrf.mxu1 }
0x298c   :  { %v1911_v50 = vadd.f32 %v1907_v49, %v1838_v6 }
0x298d   :  { %v2368_v7 = vpop.f32.mrf.mxu1 }
0x298e   :  { %2513 = vtanh.f32 %v1911_v50  ;;  %v2079_v52 = vmul.f32 -1.442695, %v1911_v50 }
0x2990   :  { %2515 = vpow2.f32 %v2079_v52 }
0x299b   :  { %v2514_v51 = vpop.eup %2513 }
0x299c   :  { %1921 = vrot.lane.b32.xlu0 %v2514_v51, %s2681_s12 }
0x299d   :  { %v2516_v53 = vpop.eup %2515 }
0x299e   :  { %v1915_v54 = vadd.f32 1.0, %v2516_v53 }
0x29a0   :  { %2517 = vrcp.f32 %v1915_v54 }
0x29ad   :  { %v2518_v55 = vpop.eup %2517 }
0x29ae   :  { %v1919_v58 = vmul.f32 %v2518_v55, %v1826_v45 }
0x2a0e   :  { %v1922_v56 = vpop.permute.xlu0 %1921 }
0x2a0f   :  { %v1924_v57 = vmul.f32 %v2518_v55, %v1922_v56 }
0x2a11   :  { %1926 = vrot.lane.b32.xlu1 %v1924_v57, %s2681_s12 }
0x2a83   :  { %v1927_v59 = vpop.permute.xlu1 %1926 }
0x2a84   :  { %v1929_v60 = vadd.f32 %v1927_v59, %v1919_v58 }
0x2a86   :  { %2519 = vtanh.f32 %v1929_v60 }
0x2a93   :  { %v2520_v61 = vpop.eup %2519 }
0x2a94   :  { %1932 = vrot.lane.b32.xlu0 %v2520_v61, %s2681_s12 }
0x2b06   :  { %v1933_v3 = vpop.permute.xlu0 %1932 }
0x2b07   :  { %v1935_v8 = vmul.f32 %v2518_v55, %v1933_v3 }
0x2b09   :  { %1937 = vrot.lane.b32.xlu1 %v1935_v8, %s2682_s3 }
0x2b7b   :  { %v1938_v9 = vpop.permute.xlu1 %1937 }
0x2b7c   :  { %1940 = vst.msk [vmem:[#allocation2 + $0x7] sm:$0x1] %vm306_vm2, %v1938_v9 }
0x2b83   :  { %v1941_v10 = vld [vmem:[#allocation2] sm:$0xff] }
0x2b84   :  { %v1942_v11 = vmax.f32 %v1941_v10, 0.0 }
0x2b86   :  { %2378 = vmatmul.mubr.msk.f32.vlgmr.msra.gmra.mxu0 %vm203_vm3, %v1942_v11 }
0x2c46   :  { %v2023_v13 = vpop.f32.mrf.mxu0 }
0x2c47   :  { %v2024_v0 = vadd.f32 %v2080_v12, %v2023_v13 }
0x2c48   :  { %v2379_v14 = vpop.f32.mrf.mxu0 }
0x2c49   :  { %2027 = vst [vmem:[#allocation15] sm:$0xff] %v2024_v0 }
0x2c4a   :  { %2652 = shalt.err (!%p2649_p6)
}
0x2c4b   :  { %2037 = dma.vmem_to_hbm [thread:$0]  %s2035_s21, 128, %s3078_s9, [#allocation6]  }
0x2c4c   :  { %2669 = dma.done.wait [#allocation6], 128  }
0x2c4d   :  { %2670 = vsyncadd [#allocation6], 4294967168 }
0x2c4e   :  { %2041 = vsyncpa [#allocation5], 1 }
0x2c4f   :  { %2042 = vsyncpa [#allocation8], 1 }
0x2c50   :  { %2043 = vsyncpa [#allocation11], 1 }
0x2c51   :  { %2044 = vsyncpa [#allocation14], 1 }
0x2c52   :  { %2045 = vsyncpa [#allocation6], 1 }

</bundles_post_ra>
